<compile_context>
chip_gen: v6e
topology: v6e:2x2x1
jax: 0.10.0
libtpu: 0.0.40
codegen_flags: <defaults>
</compile_context>

<pallas_src>
import functools

import jax
import jax.numpy as jnp
from jax.experimental import pallas as pl
from jax.experimental.pallas import tpu as pltpu


_HAS_BUFFERED = hasattr(pl, "Buffered")


@functools.lru_cache(maxsize=None)
def _vmem_limit_bytes():
    """Generation-aware scoped-VMEM limit: ~3/4 of physical (48 MiB on v7x's 64 MiB,
    ~96 MiB on v5e/v6e's 128 MiB), clamped to a safe range."""
    try:
        cap = int(pltpu.get_tpu_info().vmem_capacity_bytes)
    except Exception:  # query unavailable -> conservative (v7x-sized) fallback
        cap = 64 * 1024 * 1024
    return max(32 * 1024 * 1024, min((cap * 3) // 4, 100 * 1024 * 1024))


def _compiler_params(n_axes):
    return pltpu.CompilerParams(
        dimension_semantics=("parallel",) * n_axes,
        vmem_limit_bytes=_vmem_limit_bytes())


def _resident_spec(shape):
    """Constant-index BlockSpec: the block is identical for every grid step, so keep it
    VMEM-resident and single-buffered (a second buffer would be pure VMEM waste)."""
    zeros = (0,) * len(shape)
    index_map = lambda *_: zeros
    if _HAS_BUFFERED:
        try:
            return pl.BlockSpec(shape, index_map, pipeline_mode=pl.Buffered(1))
        except TypeError:  # pallas version without pipeline_mode on BlockSpec
            pass
    return pl.BlockSpec(shape, index_map)


def _row_tile(m, target=1024):
    """Largest tile <= target dividing m: per-grid-step overhead dominates at these
    sizes, so bigger tiles win.
    # TODO(synk): pl.cdiv + masked last block for ragged m; keep >=2 blocks on v7x."""
    for t in (1024, 512, 256, 128, 64, 32, 16, 8):
        if t <= target and m % t == 0:
            return t
    return m


# ------------------- kernel 1: LN1 + QKV + attention + proj + residual -------------------

def attn_block_kernel(x_ref, g1_ref, b1_ref, wq_ref, wk_ref, wv_ref,
                      bq_ref, bk_ref, bv_ref, bias_ref, wo_ref, bo_ref,
                      x2_ref, *, num_heads, scale, eps):
    """One batch element, entirely in VMEM/registers."""
    x = x_ref[...].astype(jnp.float32)                               # (n, C) f32 residual
    mean = jnp.mean(x, axis=-1, keepdims=True)
    var = jnp.mean(jnp.square(x - mean), axis=-1, keepdims=True)
    h1 = ((x - mean) * jax.lax.rsqrt(var + eps) * g1_ref[...]
          + b1_ref[...]).astype(jnp.bfloat16)                        # (n, C) bf16
    n = x.shape[0]

    # Per-head q/k/v straight from head-major weight blocks: no activation lane slices
    # and no (n, 3C) qkv materialization.  Column-splitting the QKV matmul per head is
    # bit-exact vs. the fused matmul (f32 MXU accumulation).
    scores, values = [], []
    for h in range(num_heads):                                       # static unroll
        q = (jnp.dot(h1, wq_ref[h], preferred_element_type=jnp.float32)
             + bq_ref[h]).astype(jnp.bfloat16)                       # (n, hd)
        k = (jnp.dot(h1, wk_ref[h], preferred_element_type=jnp.float32)
             + bk_ref[h]).astype(jnp.bfloat16)
        v = (jnp.dot(h1, wv_ref[h], preferred_element_type=jnp.float32)
             + bv_ref[h]).astype(jnp.bfloat16)
        s = jax.lax.dot_general(q, k, (((1,), (1,)), ((), ())),
                                preferred_element_type=jnp.float32)  # (n, n) = q @ k^T
        scores.append(s * scale + bias_ref[h].astype(jnp.float32))   # mask/bias in f32
        values.append(v)

    # One softmax pass for ALL heads, stacked along sublanes (cheap axis-0 concat).
    s_all = jnp.concatenate(scores, axis=0)                          # (heads*n, n) f32
    m = jnp.max(s_all, axis=-1, keepdims=True)
    p = jnp.exp(s_all - m)
    p = (p * pl.reciprocal(jnp.sum(p, axis=-1, keepdims=True), approx=True)
         ).astype(jnp.bfloat16)                                      # EUP, off VALU path

    # Per-head PV folded into the output projection (per-head rows of proj_w):
    # replaces the old per-head lane concat with f32 accumulation on full-width tiles.
    acc = x + bo_ref[...]                                            # (n, C) f32
    for h in range(num_heads):
        o_h = jnp.dot(p[h * n:(h + 1) * n], values[h],
                      preferred_element_type=jnp.float32)            # (n, hd)
        acc = acc + jnp.dot(o_h.astype(jnp.bfloat16), wo_ref[h],
                            preferred_element_type=jnp.float32)      # (n, C)
    x2_ref[...] = acc.astype(x2_ref.dtype)


def pallas_attn_block(xf, g1, b1, wq, wk, wv, bq, bk, bv, bias, wo, bo,
                      *, batch, n, num_heads, scale, eps=1e-5):
    m, c = xf.shape
    hd = c // num_heads
    return pl.pallas_call(
        functools.partial(attn_block_kernel, num_heads=num_heads, scale=scale, eps=eps),
        out_shape=jax.ShapeDtypeStruct((m, c), jnp.float32),
        grid=(batch,),
        in_specs=[pl.BlockSpec((n, c), lambda bi: (bi, 0)),   # rows of batch bi
                  _resident_spec((1, c)),                      # norm1 gamma
                  _resident_spec((1, c)),                      # norm1 beta
                  _resident_spec((num_heads, c, hd)),          # Wq (head-major)
                  _resident_spec((num_heads, c, hd)),          # Wk
                  _resident_spec((num_heads, c, hd)),          # Wv
                  _resident_spec((num_heads, 1, hd)),          # bq
                  _resident_spec((num_heads, 1, hd)),          # bk
                  _resident_spec((num_heads, 1, hd)),          # bv
                  _resident_spec((num_heads, n, n)),           # attention bias/mask (bf16)
                  _resident_spec((num_heads, hd, c)),          # proj weight, per-head rows
                  _resident_spec((1, c))],                     # proj bias
        out_specs=pl.BlockSpec((n, c), lambda bi: (bi, 0)),
        compiler_params=_compiler_params(1),
    )(xf, g1, b1, wq, wk, wv, bq, bk, bv, bias, wo, bo)


# ------------------- kernel 2: LN2 + FC1 + GELU + FC2 + residual (+ mask) -------------------

def _ln_mlp_residual(x2_ref, g2_ref, b2_ref, w1_ref, fb1_ref, w2_ref, fb2_ref, eps):
    x2 = x2_ref[...].astype(jnp.float32)                             # (tm, C)
    mean = jnp.mean(x2, axis=-1, keepdims=True)
    var = jnp.mean(jnp.square(x2 - mean), axis=-1, keepdims=True)
    h2 = ((x2 - mean) * jax.lax.rsqrt(var + eps) * g2_ref[...]
          + b2_ref[...]).astype(jnp.bfloat16)
    hid = jnp.dot(h2, w1_ref[...], preferred_element_type=jnp.float32) + fb1_ref[...]
    # TODO(synk): PyTorch nn.GELU() defaults to exact erf GELU; tanh approximation is
    # used because erf lowering in Mosaic is not guaranteed.
    hid = jax.nn.gelu(hid, approximate=True).astype(jnp.bfloat16)
    return x2 + jnp.dot(hid, w2_ref[...], preferred_element_type=jnp.float32) + fb2_ref[...]


def mlp_block_kernel(x2_ref, g2_ref, b2_ref, w1_ref, fb1_ref, w2_ref, fb2_ref,
                     o_ref, *, eps):
    out = _ln_mlp_residual(x2_ref, g2_ref, b2_ref, w1_ref, fb1_ref, w2_ref, fb2_ref, eps)
    o_ref[...] = out.astype(o_ref.dtype)


def mlp_block_mask_kernel(x2_ref, g2_ref, b2_ref, w1_ref, fb1_ref, w2_ref, fb2_ref,
                          m_ref, o_ref, *, eps):
    out = _ln_mlp_residual(x2_ref, g2_ref, b2_ref, w1_ref, fb1_ref, w2_ref, fb2_ref, eps)
    o_ref[...] = (out * m_ref[...]).astype(o_ref.dtype)


def pallas_mlp_block(x2, g2, b2, w1, fb1, w2, fb2, mask=None, *, eps=1e-5):
    m, c = x2.shape
    hidden = w1.shape[1]
    tm = _row_tile(m)
    in_specs = [pl.BlockSpec((tm, c), lambda i: (i, 0)),
                _resident_spec((1, c)),
                _resident_spec((1, c)),
                _resident_spec((c, hidden)),
                _resident_spec((1, hidden)),
                _resident_spec((hidden, c)),
                _resident_spec((1, c))]
    args = [x2, g2, b2, w1, fb1, w2, fb2]
    kernel = functools.partial(mlp_block_kernel, eps=eps)
    if mask is not None:
        in_specs.append(pl.BlockSpec((tm, 1), lambda i: (i, 0)))
        args.append(mask)
        kernel = functools.partial(mlp_block_mask_kernel, eps=eps)
    # TODO(synk): at production sizes fold the (tm, C=32) output tile into a lane-dense
    # (tm//4, 128) slab before the store so vst is unmasked.
    return pl.pallas_call(
        kernel,
        out_shape=jax.ShapeDtypeStruct((m, c), x2.dtype),
        grid=(m // tm,),
        in_specs=in_specs,
        out_specs=pl.BlockSpec((tm, c), lambda i: (i, 0)),
        compiler_params=_compiler_params(1),
    )(*args)


# ------------------------------- glue (JAX) --------------------------------

def build_nat_bias(H, W, K, rpb):
    """bf16 additive bias (heads, H*W, H*W): rpb inside the clamped KxK window,
    finfo(bf16).min outside (finite in both bf16 and f32, so no overflow)."""
    # TODO(synk): double-check rel_h/rel_w indexing against NATTEN's exact
    # window-relative convention for border/clamped queries.
    num_heads = rpb.shape[0]
    ih, iw = jnp.arange(H), jnp.arange(W)
    start_h = jnp.clip(ih - K // 2, 0, H - K)
    start_w = jnp.clip(iw - K // 2, 0, W - K)
    ah, aw = jnp.arange(H), jnp.arange(W)
    mask_h = (ah[None, :] >= start_h[:, None]) & (ah[None, :] < start_h[:, None] + K)
    mask_w = (aw[None, :] >= start_w[:, None]) & (aw[None, :] < start_w[:, None] + K)
    rel_h = jnp.clip(ah[None, :] - ih[:, None] + K - 1, 0, 2 * K - 2)   # (H, H)
    rel_w = jnp.clip(aw[None, :] - iw[:, None] + K - 1, 0, 2 * K - 2)   # (W, W)
    bias = rpb[:, rel_h[:, :, None, None], rel_w[None, None, :, :]]     # (h,qi,ki,qj,kj)
    mask = mask_h[:, :, None, None] & mask_w[None, None, :, :]
    neg = float(jnp.finfo(jnp.bfloat16).min)
    bias = jnp.where(mask[None], bias, neg)
    bias = bias.transpose(0, 1, 3, 2, 4).reshape(num_heads, H * W, H * W)
    return bias.astype(jnp.bfloat16)


def init_params(key, dim, num_heads, kernel_size, mlp_ratio):
    hidden = int(dim * mlp_ratio)
    keys = jax.random.split(key, 6)
    s = 0.02
    return {
        "norm1_g": jnp.ones((dim,), jnp.float32),
        "norm1_b": jnp.zeros((dim,), jnp.float32),
        "qkv_w": jax.random.normal(keys[0], (dim, 3 * dim), jnp.float32) * s,
        "qkv_b": jax.random.normal(keys[1], (3 * dim,), jnp.float32) * s,
        "rpb": jax.random.normal(
            keys[2], (num_heads, 2 * kernel_size - 1, 2 * kernel_size - 1),
            jnp.float32) * s,
        "proj_w": jax.random.normal(keys[3], (dim, dim), jnp.float32) * s,
        "proj_b": jnp.zeros((dim,), jnp.float32),
        "norm2_g": jnp.ones((dim,), jnp.float32),
        "norm2_b": jnp.zeros((dim,), jnp.float32),
        "fc1_w": jax.random.normal(keys[4], (dim, hidden), jnp.float32) * s,
        "fc1_b": jnp.zeros((hidden,), jnp.float32),
        "fc2_w": jax.random.normal(keys[5], (hidden, dim), jnp.float32) * s,
        "fc2_b": jnp.zeros((dim,), jnp.float32),
    }


def nat_layer_forward(x, x_mask, params, num_heads, kernel_size):
    """drop=0, drop_path=0, layer_scale=None path of NATLayer.forward."""
    B, H, W, C = x.shape
    N = H * W
    M = B * N
    hd = C // num_heads
    scale = hd ** -0.5
    bias = build_nat_bias(H, W, kernel_size, params["rpb"])          # (heads, N, N) bf16

    # Head-major weight layouts so the kernel indexes whole per-head blocks instead of
    # lane-slicing activations.
    # TODO(synk): on v7x an fp8 weight path (bf16 activations x fp8 weights) would halve
    # weight DMA and ~double MXU throughput at production dims.
    qkv_w = params["qkv_w"].reshape(C, 3, num_heads, hd).transpose(1, 2, 0, 3)
    wq = qkv_w[0].astype(jnp.bfloat16)                               # (heads, C, hd)
    wk = qkv_w[1].astype(jnp.bfloat16)
    wv = qkv_w[2].astype(jnp.bfloat16)
    qkv_b = params["qkv_b"].reshape(3, num_heads, 1, hd).astype(jnp.float32)
    bq, bk, bv = qkv_b[0], qkv_b[1], qkv_b[2]                        # (heads, 1, hd)
    wo = params["proj_w"].reshape(num_heads, hd, C).astype(jnp.bfloat16)
    bo = params["proj_b"].reshape(1, C).astype(jnp.float32)
    w1 = params["fc1_w"].astype(jnp.bfloat16)
    fb1 = params["fc1_b"].reshape(1, -1).astype(jnp.float32)
    w2 = params["fc2_w"].astype(jnp.bfloat16)
    fb2 = params["fc2_b"].reshape(1, C).astype(jnp.float32)

    # Residual stream stays f32 (matches the PyTorch module).
    # TODO(synk): use a bf16 residual stream at production sizes on bandwidth-poor v5e.
    xf = x.reshape(M, C)

    # Kernel 1: LN1 + QKV + neighborhood attention + proj + residual  (grid over batch).
    x2 = pallas_attn_block(xf, params["norm1_g"].reshape(1, C),
                           params["norm1_b"].reshape(1, C),
                           wq, wk, wv, bq, bk, bv, bias, wo, bo,
                           batch=B, n=N, num_heads=num_heads, scale=scale)
    # Kernel 2: LN2 + FC1 + GELU + FC2 + residual + x_mask  (row-tiled grid).
    mask_f = None if x_mask is None else x_mask.reshape(M, 1).astype(x2.dtype)
    out = pallas_mlp_block(x2, params["norm2_g"].reshape(1, C),
                           params["norm2_b"].reshape(1, C),
                           w1, fb1, w2, fb2, mask=mask_f)
    return out.reshape(B, H, W, C)


# Pure-JAX reference with the same precision policy (validates the kernels).
def nat_layer_reference(x, x_mask, params, num_heads, kernel_size):
    B, H, W, C = x.shape
    N = H * W
    M = B * N
    hd = C // num_heads
    scale = hd ** -0.5
    bias = build_nat_bias(H, W, kernel_size, params["rpb"]).astype(jnp.float32)
    qkv_w = params["qkv_w"].astype(jnp.bfloat16)
    proj_w = params["proj_w"].astype(jnp.bfloat16)
    fc1_w = params["fc1_w"].astype(jnp.bfloat16)
    fc2_w = params["fc2_w"].astype(jnp.bfloat16)

    def ln(z, g, b):
        mu = jnp.mean(z, -1, keepdims=True)
        va = jnp.mean(jnp.square(z - mu), -1, keepdims=True)
        return (z - mu) * jax.lax.rsqrt(va + 1e-5) * g + b

    xf = x.reshape(M, C)
    h1 = ln(xf, params["norm1_g"], params["norm1_b"]).astype(jnp.bfloat16)
    qkv = (jnp.dot(h1, qkv_w, preferred_element_type=jnp.float32)
           + params["qkv_b"]).astype(jnp.bfloat16)                    # (M, 3C)
    q = qkv[:, :C].reshape(B, N, num_heads, hd)
    k = qkv[:, C:2 * C].reshape(B, N, num_heads, hd)
    v = qkv[:, 2 * C:].reshape(B, N, num_heads, hd)
    s = jnp.einsum("bnhd,bmhd->bhnm", q, k, preferred_element_type=jnp.float32)
    s = s * scale + bias[None]
    p = jax.nn.softmax(s, axis=-1)
    a = jnp.einsum("bhnm,bmhd->bnhd", p.astype(jnp.bfloat16), v,
                   preferred_element_type=jnp.float32)
    a = a.reshape(M, C).astype(jnp.bfloat16)
    x2 = xf + (jnp.dot(a, proj_w, preferred_element_type=jnp.float32)
               + params["proj_b"])
    h2 = ln(x2, params["norm2_g"], params["norm2_b"]).astype(jnp.bfloat16)
    hid = jax.nn.gelu(jnp.dot(h2, fc1_w, preferred_element_type=jnp.float32)
                      + params["fc1_b"], approximate=True).astype(jnp.bfloat16)
    out = x2 + (jnp.dot(hid, fc2_w, preferred_element_type=jnp.float32)
                + params["fc2_b"])
    out = out.reshape(B, H, W, C)
    return out * x_mask if x_mask is not None else out


if __name__ == "__main__":
    B, H, W, dim = 2, 8, 8, 32
    num_heads, kernel_size, mlp_ratio = 4, 7, 4.0

    key = jax.random.PRNGKey(0)
    kx, km, kp = jax.random.split(key, 3)
    x = jax.random.normal(kx, (B, H, W, dim), jnp.float32)
    x_mask = (jax.random.uniform(km, (B, H, W, 1)) > 0.3).astype(jnp.float32)
    params = init_params(kp, dim, num_heads, kernel_size, mlp_ratio)

    out = nat_layer_forward(x, x_mask, params, num_heads, kernel_size)
    out = jax.block_until_ready(out)

    ref = nat_layer_reference(x, x_mask, params, num_heads, kernel_size)
    err = float(jnp.max(jnp.abs(out - ref)))
    assert err < 2e-2, f"max abs err {err}"
    print("KERNEL_OK")
</pallas_src>

<mosaic_0001>
module attributes {stable_mosaic.version = 11 : i64} {
  func.func @attn_block_kernel(%arg0: i32, %arg1: memref<64x32xf32, #tpu.memory_space<vmem>>, %arg2: memref<1x32xf32, #tpu.memory_space<vmem>>, %arg3: memref<1x32xf32, #tpu.memory_space<vmem>>, %arg4: memref<4x32x8xbf16, #tpu.memory_space<vmem>>, %arg5: memref<4x32x8xbf16, #tpu.memory_space<vmem>>, %arg6: memref<4x32x8xbf16, #tpu.memory_space<vmem>>, %arg7: memref<4x1x8xf32, #tpu.memory_space<vmem>>, %arg8: memref<4x1x8xf32, #tpu.memory_space<vmem>>, %arg9: memref<4x1x8xf32, #tpu.memory_space<vmem>>, %arg10: memref<4x64x64xbf16, #tpu.memory_space<vmem>>, %arg11: memref<4x8x32xbf16, #tpu.memory_space<vmem>>, %arg12: memref<1x32xf32, #tpu.memory_space<vmem>>, %arg13: memref<64x32xf32, #tpu.memory_space<vmem>>) attributes {dimension_semantics = [#tpu.dimension_semantics<parallel>], iteration_bounds = array<i64: 2>, scalar_prefetch = 0 : i64, scratch_operands = 0 : i64, tpu.core_type = #tpu.core_type<tc>, window_params = [{transform_indices = @transform_0, window_bounds = array<i64: 64, 32>}, {pipeline_mode = #tpu.pipeline_mode<synchronous>, transform_indices = @transform_1, window_bounds = array<i64: 1, 32>}, {pipeline_mode = #tpu.pipeline_mode<synchronous>, transform_indices = @transform_2, window_bounds = array<i64: 1, 32>}, {pipeline_mode = #tpu.pipeline_mode<synchronous>, transform_indices = @transform_3, window_bounds = array<i64: 4, 32, 8>}, {pipeline_mode = #tpu.pipeline_mode<synchronous>, transform_indices = @transform_4, window_bounds = array<i64: 4, 32, 8>}, {pipeline_mode = #tpu.pipeline_mode<synchronous>, transform_indices = @transform_5, window_bounds = array<i64: 4, 32, 8>}, {pipeline_mode = #tpu.pipeline_mode<synchronous>, transform_indices = @transform_6, window_bounds = array<i64: 4, 1, 8>}, {pipeline_mode = #tpu.pipeline_mode<synchronous>, transform_indices = @transform_7, window_bounds = array<i64: 4, 1, 8>}, {pipeline_mode = #tpu.pipeline_mode<synchronous>, transform_indices = @transform_8, window_bounds = array<i64: 4, 1, 8>}, {pipeline_mode = #tpu.pipeline_mode<synchronous>, transform_indices = @transform_9, window_bounds = array<i64: 4, 64, 64>}, {pipeline_mode = #tpu.pipeline_mode<synchronous>, transform_indices = @transform_10, window_bounds = array<i64: 4, 8, 32>}, {pipeline_mode = #tpu.pipeline_mode<synchronous>, transform_indices = @transform_11, window_bounds = array<i64: 1, 32>}, {transform_indices = @transform_12, window_bounds = array<i64: 64, 32>}]} {
    %c0 = arith.constant 0 : index
    %c0_0 = arith.constant 0 : index
    %0 = vector.load %arg1[%c0, %c0_0] : memref<64x32xf32, #tpu.memory_space<vmem>>, vector<64x32xf32>
    %cst = arith.constant dense<0.000000e+00> : vector<64xf32>
    %1 = vector.multi_reduction <add>, %0, %cst [1] : vector<64x32xf32> to vector<64xf32>
    %2 = vector.shape_cast %1 : vector<64xf32> to vector<64x1xf32>
    %cst_1 = arith.constant 3.200000e+01 : f32
    %3 = vector.broadcast %cst_1 : f32 to vector<64x1xf32>
    %4 = arith.divf %2, %3 : vector<64x1xf32>
    %5 = vector.broadcast %4 : vector<64x1xf32> to vector<64x32xf32>
    %6 = arith.subf %0, %5 : vector<64x32xf32>
    %7 = arith.mulf %6, %6 : vector<64x32xf32>
    %cst_2 = arith.constant dense<0.000000e+00> : vector<64xf32>
    %8 = vector.multi_reduction <add>, %7, %cst_2 [1] : vector<64x32xf32> to vector<64xf32>
    %9 = vector.shape_cast %8 : vector<64xf32> to vector<64x1xf32>
    %cst_3 = arith.constant 3.200000e+01 : f32
    %10 = vector.broadcast %cst_3 : f32 to vector<64x1xf32>
    %11 = arith.divf %9, %10 : vector<64x1xf32>
    %12 = vector.broadcast %4 : vector<64x1xf32> to vector<64x32xf32>
    %13 = arith.subf %0, %12 : vector<64x32xf32>
    %cst_4 = arith.constant 9.99999974E-6 : f32
    %14 = vector.broadcast %cst_4 : f32 to vector<64x1xf32>
    %15 = arith.addf %11, %14 : vector<64x1xf32>
    %16 = math.rsqrt %15 : vector<64x1xf32>
    %17 = vector.broadcast %16 : vector<64x1xf32> to vector<64x32xf32>
    %18 = arith.mulf %13, %17 : vector<64x32xf32>
    %c0_5 = arith.constant 0 : index
    %c0_6 = arith.constant 0 : index
    %19 = vector.load %arg2[%c0_5, %c0_6] : memref<1x32xf32, #tpu.memory_space<vmem>>, vector<1x32xf32>
    %20 = vector.broadcast %19 : vector<1x32xf32> to vector<64x32xf32>
    %21 = arith.mulf %18, %20 : vector<64x32xf32>
    %c0_7 = arith.constant 0 : index
    %c0_8 = arith.constant 0 : index
    %22 = vector.load %arg3[%c0_7, %c0_8] : memref<1x32xf32, #tpu.memory_space<vmem>>, vector<1x32xf32>
    %23 = vector.broadcast %22 : vector<1x32xf32> to vector<64x32xf32>
    %24 = arith.addf %21, %23 : vector<64x32xf32>
    %25 = arith.truncf %24 : vector<64x32xf32> to vector<64x32xbf16>
    %c0_9 = arith.constant 0 : index
    %c0_10 = arith.constant 0 : index
    %c0_11 = arith.constant 0 : index
    %26 = vector.load %arg4[%c0_9, %c0_10, %c0_11] : memref<4x32x8xbf16, #tpu.memory_space<vmem>>, vector<1x32x8xbf16>
    %27 = vector.shape_cast %26 : vector<1x32x8xbf16> to vector<32x8xbf16>
    %cst_12 = arith.constant dense<0.000000e+00> : vector<64x8xf32>
    %28 = tpu.matmul %25, %27, %cst_12 {dimension_numbers = #tpu.dot_dimension_numbers<[1], [0], [0], [1], [0, 0, 1, 1], [], []>} : vector<64x32xbf16>, vector<32x8xbf16>, vector<64x8xf32> -> vector<64x8xf32>
    %c0_13 = arith.constant 0 : index
    %c0_14 = arith.constant 0 : index
    %c0_15 = arith.constant 0 : index
    %29 = vector.load %arg7[%c0_13, %c0_14, %c0_15] : memref<4x1x8xf32, #tpu.memory_space<vmem>>, vector<1x1x8xf32>
    %30 = vector.shape_cast %29 : vector<1x1x8xf32> to vector<1x8xf32>
    %31 = vector.broadcast %30 : vector<1x8xf32> to vector<64x8xf32>
    %32 = arith.addf %28, %31 : vector<64x8xf32>
    %33 = arith.truncf %32 : vector<64x8xf32> to vector<64x8xbf16>
    %c0_16 = arith.constant 0 : index
    %c0_17 = arith.constant 0 : index
    %c0_18 = arith.constant 0 : index
    %34 = vector.load %arg5[%c0_16, %c0_17, %c0_18] : memref<4x32x8xbf16, #tpu.memory_space<vmem>>, vector<1x32x8xbf16>
    %35 = vector.shape_cast %34 : vector<1x32x8xbf16> to vector<32x8xbf16>
    %cst_19 = arith.constant dense<0.000000e+00> : vector<64x8xf32>
    %36 = tpu.matmul %25, %35, %cst_19 {dimension_numbers = #tpu.dot_dimension_numbers<[1], [0], [0], [1], [0, 0, 1, 1], [], []>} : vector<64x32xbf16>, vector<32x8xbf16>, vector<64x8xf32> -> vector<64x8xf32>
    %c0_20 = arith.constant 0 : index
    %c0_21 = arith.constant 0 : index
    %c0_22 = arith.constant 0 : index
    %37 = vector.load %arg8[%c0_20, %c0_21, %c0_22] : memref<4x1x8xf32, #tpu.memory_space<vmem>>, vector<1x1x8xf32>
    %38 = vector.shape_cast %37 : vector<1x1x8xf32> to vector<1x8xf32>
    %39 = vector.broadcast %38 : vector<1x8xf32> to vector<64x8xf32>
    %40 = arith.addf %36, %39 : vector<64x8xf32>
    %41 = arith.truncf %40 : vector<64x8xf32> to vector<64x8xbf16>
    %c0_23 = arith.constant 0 : index
    %c0_24 = arith.constant 0 : index
    %c0_25 = arith.constant 0 : index
    %42 = vector.load %arg6[%c0_23, %c0_24, %c0_25] : memref<4x32x8xbf16, #tpu.memory_space<vmem>>, vector<1x32x8xbf16>
    %43 = vector.shape_cast %42 : vector<1x32x8xbf16> to vector<32x8xbf16>
    %cst_26 = arith.constant dense<0.000000e+00> : vector<64x8xf32>
    %44 = tpu.matmul %25, %43, %cst_26 {dimension_numbers = #tpu.dot_dimension_numbers<[1], [0], [0], [1], [0, 0, 1, 1], [], []>} : vector<64x32xbf16>, vector<32x8xbf16>, vector<64x8xf32> -> vector<64x8xf32>
    %c0_27 = arith.constant 0 : index
    %c0_28 = arith.constant 0 : index
    %c0_29 = arith.constant 0 : index
    %45 = vector.load %arg9[%c0_27, %c0_28, %c0_29] : memref<4x1x8xf32, #tpu.memory_space<vmem>>, vector<1x1x8xf32>
    %46 = vector.shape_cast %45 : vector<1x1x8xf32> to vector<1x8xf32>
    %47 = vector.broadcast %46 : vector<1x8xf32> to vector<64x8xf32>
    %48 = arith.addf %44, %47 : vector<64x8xf32>
    %49 = arith.truncf %48 : vector<64x8xf32> to vector<64x8xbf16>
    %cst_30 = arith.constant dense<0.000000e+00> : vector<64x64xf32>
    %50 = tpu.matmul %33, %41, %cst_30 {dimension_numbers = #tpu.dot_dimension_numbers<[1], [1], [0], [0], [0, 0, 1, 0], [], []>} : vector<64x8xbf16>, vector<64x8xbf16>, vector<64x64xf32> -> vector<64x64xf32>
    %cst_31 = arith.constant 0.353553385 : f32
    %51 = vector.broadcast %cst_31 : f32 to vector<64x64xf32>
    %52 = arith.mulf %50, %51 : vector<64x64xf32>
    %c0_32 = arith.constant 0 : index
    %c0_33 = arith.constant 0 : index
    %c0_34 = arith.constant 0 : index
    %53 = vector.load %arg10[%c0_32, %c0_33, %c0_34] : memref<4x64x64xbf16, #tpu.memory_space<vmem>>, vector<1x64x64xbf16>
    %54 = vector.shape_cast %53 : vector<1x64x64xbf16> to vector<64x64xbf16>
    %55 = arith.extf %54 : vector<64x64xbf16> to vector<64x64xf32>
    %56 = arith.addf %52, %55 : vector<64x64xf32>
    %c1 = arith.constant 1 : index
    %c0_35 = arith.constant 0 : index
    %c0_36 = arith.constant 0 : index
    %57 = vector.load %arg4[%c1, %c0_35, %c0_36] : memref<4x32x8xbf16, #tpu.memory_space<vmem>>, vector<1x32x8xbf16>
    %58 = vector.shape_cast %57 : vector<1x32x8xbf16> to vector<32x8xbf16>
    %cst_37 = arith.constant dense<0.000000e+00> : vector<64x8xf32>
    %59 = tpu.matmul %25, %58, %cst_37 {dimension_numbers = #tpu.dot_dimension_numbers<[1], [0], [0], [1], [0, 0, 1, 1], [], []>} : vector<64x32xbf16>, vector<32x8xbf16>, vector<64x8xf32> -> vector<64x8xf32>
    %c1_38 = arith.constant 1 : index
    %c0_39 = arith.constant 0 : index
    %c0_40 = arith.constant 0 : index
    %60 = vector.load %arg7[%c1_38, %c0_39, %c0_40] : memref<4x1x8xf32, #tpu.memory_space<vmem>>, vector<1x1x8xf32>
    %61 = vector.shape_cast %60 : vector<1x1x8xf32> to vector<1x8xf32>
    %62 = vector.broadcast %61 : vector<1x8xf32> to vector<64x8xf32>
    %63 = arith.addf %59, %62 : vector<64x8xf32>
    %64 = arith.truncf %63 : vector<64x8xf32> to vector<64x8xbf16>
    %c1_41 = arith.constant 1 : index
    %c0_42 = arith.constant 0 : index
    %c0_43 = arith.constant 0 : index
    %65 = vector.load %arg5[%c1_41, %c0_42, %c0_43] : memref<4x32x8xbf16, #tpu.memory_space<vmem>>, vector<1x32x8xbf16>
    %66 = vector.shape_cast %65 : vector<1x32x8xbf16> to vector<32x8xbf16>
    %cst_44 = arith.constant dense<0.000000e+00> : vector<64x8xf32>
    %67 = tpu.matmul %25, %66, %cst_44 {dimension_numbers = #tpu.dot_dimension_numbers<[1], [0], [0], [1], [0, 0, 1, 1], [], []>} : vector<64x32xbf16>, vector<32x8xbf16>, vector<64x8xf32> -> vector<64x8xf32>
    %c1_45 = arith.constant 1 : index
    %c0_46 = arith.constant 0 : index
    %c0_47 = arith.constant 0 : index
    %68 = vector.load %arg8[%c1_45, %c0_46, %c0_47] : memref<4x1x8xf32, #tpu.memory_space<vmem>>, vector<1x1x8xf32>
    %69 = vector.shape_cast %68 : vector<1x1x8xf32> to vector<1x8xf32>
    %70 = vector.broadcast %69 : vector<1x8xf32> to vector<64x8xf32>
    %71 = arith.addf %67, %70 : vector<64x8xf32>
    %72 = arith.truncf %71 : vector<64x8xf32> to vector<64x8xbf16>
    %c1_48 = arith.constant 1 : index
    %c0_49 = arith.constant 0 : index
    %c0_50 = arith.constant 0 : index
    %73 = vector.load %arg6[%c1_48, %c0_49, %c0_50] : memref<4x32x8xbf16, #tpu.memory_space<vmem>>, vector<1x32x8xbf16>
    %74 = vector.shape_cast %73 : vector<1x32x8xbf16> to vector<32x8xbf16>
    %cst_51 = arith.constant dense<0.000000e+00> : vector<64x8xf32>
    %75 = tpu.matmul %25, %74, %cst_51 {dimension_numbers = #tpu.dot_dimension_numbers<[1], [0], [0], [1], [0, 0, 1, 1], [], []>} : vector<64x32xbf16>, vector<32x8xbf16>, vector<64x8xf32> -> vector<64x8xf32>
    %c1_52 = arith.constant 1 : index
    %c0_53 = arith.constant 0 : index
    %c0_54 = arith.constant 0 : index
    %76 = vector.load %arg9[%c1_52, %c0_53, %c0_54] : memref<4x1x8xf32, #tpu.memory_space<vmem>>, vector<1x1x8xf32>
    %77 = vector.shape_cast %76 : vector<1x1x8xf32> to vector<1x8xf32>
    %78 = vector.broadcast %77 : vector<1x8xf32> to vector<64x8xf32>
    %79 = arith.addf %75, %78 : vector<64x8xf32>
    %80 = arith.truncf %79 : vector<64x8xf32> to vector<64x8xbf16>
    %cst_55 = arith.constant dense<0.000000e+00> : vector<64x64xf32>
    %81 = tpu.matmul %64, %72, %cst_55 {dimension_numbers = #tpu.dot_dimension_numbers<[1], [1], [0], [0], [0, 0, 1, 0], [], []>} : vector<64x8xbf16>, vector<64x8xbf16>, vector<64x64xf32> -> vector<64x64xf32>
    %cst_56 = arith.constant 0.353553385 : f32
    %82 = vector.broadcast %cst_56 : f32 to vector<64x64xf32>
    %83 = arith.mulf %81, %82 : vector<64x64xf32>
    %c1_57 = arith.constant 1 : index
    %c0_58 = arith.constant 0 : index
    %c0_59 = arith.constant 0 : index
    %84 = vector.load %arg10[%c1_57, %c0_58, %c0_59] : memref<4x64x64xbf16, #tpu.memory_space<vmem>>, vector<1x64x64xbf16>
    %85 = vector.shape_cast %84 : vector<1x64x64xbf16> to vector<64x64xbf16>
    %86 = arith.extf %85 : vector<64x64xbf16> to vector<64x64xf32>
    %87 = arith.addf %83, %86 : vector<64x64xf32>
    %c2 = arith.constant 2 : index
    %c0_60 = arith.constant 0 : index
    %c0_61 = arith.constant 0 : index
    %88 = vector.load %arg4[%c2, %c0_60, %c0_61] : memref<4x32x8xbf16, #tpu.memory_space<vmem>>, vector<1x32x8xbf16>
    %89 = vector.shape_cast %88 : vector<1x32x8xbf16> to vector<32x8xbf16>
    %cst_62 = arith.constant dense<0.000000e+00> : vector<64x8xf32>
    %90 = tpu.matmul %25, %89, %cst_62 {dimension_numbers = #tpu.dot_dimension_numbers<[1], [0], [0], [1], [0, 0, 1, 1], [], []>} : vector<64x32xbf16>, vector<32x8xbf16>, vector<64x8xf32> -> vector<64x8xf32>
    %c2_63 = arith.constant 2 : index
    %c0_64 = arith.constant 0 : index
    %c0_65 = arith.constant 0 : index
    %91 = vector.load %arg7[%c2_63, %c0_64, %c0_65] : memref<4x1x8xf32, #tpu.memory_space<vmem>>, vector<1x1x8xf32>
    %92 = vector.shape_cast %91 : vector<1x1x8xf32> to vector<1x8xf32>
    %93 = vector.broadcast %92 : vector<1x8xf32> to vector<64x8xf32>
    %94 = arith.addf %90, %93 : vector<64x8xf32>
    %95 = arith.truncf %94 : vector<64x8xf32> to vector<64x8xbf16>
    %c2_66 = arith.constant 2 : index
    %c0_67 = arith.constant 0 : index
    %c0_68 = arith.constant 0 : index
    %96 = vector.load %arg5[%c2_66, %c0_67, %c0_68] : memref<4x32x8xbf16, #tpu.memory_space<vmem>>, vector<1x32x8xbf16>
    %97 = vector.shape_cast %96 : vector<1x32x8xbf16> to vector<32x8xbf16>
    %cst_69 = arith.constant dense<0.000000e+00> : vector<64x8xf32>
    %98 = tpu.matmul %25, %97, %cst_69 {dimension_numbers = #tpu.dot_dimension_numbers<[1], [0], [0], [1], [0, 0, 1, 1], [], []>} : vector<64x32xbf16>, vector<32x8xbf16>, vector<64x8xf32> -> vector<64x8xf32>
    %c2_70 = arith.constant 2 : index
    %c0_71 = arith.constant 0 : index
    %c0_72 = arith.constant 0 : index
    %99 = vector.load %arg8[%c2_70, %c0_71, %c0_72] : memref<4x1x8xf32, #tpu.memory_space<vmem>>, vector<1x1x8xf32>
    %100 = vector.shape_cast %99 : vector<1x1x8xf32> to vector<1x8xf32>
    %101 = vector.broadcast %100 : vector<1x8xf32> to vector<64x8xf32>
    %102 = arith.addf %98, %101 : vector<64x8xf32>
    %103 = arith.truncf %102 : vector<64x8xf32> to vector<64x8xbf16>
    %c2_73 = arith.constant 2 : index
    %c0_74 = arith.constant 0 : index
    %c0_75 = arith.constant 0 : index
    %104 = vector.load %arg6[%c2_73, %c0_74, %c0_75] : memref<4x32x8xbf16, #tpu.memory_space<vmem>>, vector<1x32x8xbf16>
    %105 = vector.shape_cast %104 : vector<1x32x8xbf16> to vector<32x8xbf16>
    %cst_76 = arith.constant dense<0.000000e+00> : vector<64x8xf32>
    %106 = tpu.matmul %25, %105, %cst_76 {dimension_numbers = #tpu.dot_dimension_numbers<[1], [0], [0], [1], [0, 0, 1, 1], [], []>} : vector<64x32xbf16>, vector<32x8xbf16>, vector<64x8xf32> -> vector<64x8xf32>
    %c2_77 = arith.constant 2 : index
    %c0_78 = arith.constant 0 : index
    %c0_79 = arith.constant 0 : index
    %107 = vector.load %arg9[%c2_77, %c0_78, %c0_79] : memref<4x1x8xf32, #tpu.memory_space<vmem>>, vector<1x1x8xf32>
    %108 = vector.shape_cast %107 : vector<1x1x8xf32> to vector<1x8xf32>
    %109 = vector.broadcast %108 : vector<1x8xf32> to vector<64x8xf32>
    %110 = arith.addf %106, %109 : vector<64x8xf32>
    %111 = arith.truncf %110 : vector<64x8xf32> to vector<64x8xbf16>
    %cst_80 = arith.constant dense<0.000000e+00> : vector<64x64xf32>
    %112 = tpu.matmul %95, %103, %cst_80 {dimension_numbers = #tpu.dot_dimension_numbers<[1], [1], [0], [0], [0, 0, 1, 0], [], []>} : vector<64x8xbf16>, vector<64x8xbf16>, vector<64x64xf32> -> vector<64x64xf32>
    %cst_81 = arith.constant 0.353553385 : f32
    %113 = vector.broadcast %cst_81 : f32 to vector<64x64xf32>
    %114 = arith.mulf %112, %113 : vector<64x64xf32>
    %c2_82 = arith.constant 2 : index
    %c0_83 = arith.constant 0 : index
    %c0_84 = arith.constant 0 : index
    %115 = vector.load %arg10[%c2_82, %c0_83, %c0_84] : memref<4x64x64xbf16, #tpu.memory_space<vmem>>, vector<1x64x64xbf16>
    %116 = vector.shape_cast %115 : vector<1x64x64xbf16> to vector<64x64xbf16>
    %117 = arith.extf %116 : vector<64x64xbf16> to vector<64x64xf32>
    %118 = arith.addf %114, %117 : vector<64x64xf32>
    %c3 = arith.constant 3 : index
    %c0_85 = arith.constant 0 : index
    %c0_86 = arith.constant 0 : index
    %119 = vector.load %arg4[%c3, %c0_85, %c0_86] : memref<4x32x8xbf16, #tpu.memory_space<vmem>>, vector<1x32x8xbf16>
    %120 = vector.shape_cast %119 : vector<1x32x8xbf16> to vector<32x8xbf16>
    %cst_87 = arith.constant dense<0.000000e+00> : vector<64x8xf32>
    %121 = tpu.matmul %25, %120, %cst_87 {dimension_numbers = #tpu.dot_dimension_numbers<[1], [0], [0], [1], [0, 0, 1, 1], [], []>} : vector<64x32xbf16>, vector<32x8xbf16>, vector<64x8xf32> -> vector<64x8xf32>
    %c3_88 = arith.constant 3 : index
    %c0_89 = arith.constant 0 : index
    %c0_90 = arith.constant 0 : index
    %122 = vector.load %arg7[%c3_88, %c0_89, %c0_90] : memref<4x1x8xf32, #tpu.memory_space<vmem>>, vector<1x1x8xf32>
    %123 = vector.shape_cast %122 : vector<1x1x8xf32> to vector<1x8xf32>
    %124 = vector.broadcast %123 : vector<1x8xf32> to vector<64x8xf32>
    %125 = arith.addf %121, %124 : vector<64x8xf32>
    %126 = arith.truncf %125 : vector<64x8xf32> to vector<64x8xbf16>
    %c3_91 = arith.constant 3 : index
    %c0_92 = arith.constant 0 : index
    %c0_93 = arith.constant 0 : index
    %127 = vector.load %arg5[%c3_91, %c0_92, %c0_93] : memref<4x32x8xbf16, #tpu.memory_space<vmem>>, vector<1x32x8xbf16>
    %128 = vector.shape_cast %127 : vector<1x32x8xbf16> to vector<32x8xbf16>
    %cst_94 = arith.constant dense<0.000000e+00> : vector<64x8xf32>
    %129 = tpu.matmul %25, %128, %cst_94 {dimension_numbers = #tpu.dot_dimension_numbers<[1], [0], [0], [1], [0, 0, 1, 1], [], []>} : vector<64x32xbf16>, vector<32x8xbf16>, vector<64x8xf32> -> vector<64x8xf32>
    %c3_95 = arith.constant 3 : index
    %c0_96 = arith.constant 0 : index
    %c0_97 = arith.constant 0 : index
    %130 = vector.load %arg8[%c3_95, %c0_96, %c0_97] : memref<4x1x8xf32, #tpu.memory_space<vmem>>, vector<1x1x8xf32>
    %131 = vector.shape_cast %130 : vector<1x1x8xf32> to vector<1x8xf32>
    %132 = vector.broadcast %131 : vector<1x8xf32> to vector<64x8xf32>
    %133 = arith.addf %129, %132 : vector<64x8xf32>
    %134 = arith.truncf %133 : vector<64x8xf32> to vector<64x8xbf16>
    %c3_98 = arith.constant 3 : index
    %c0_99 = arith.constant 0 : index
    %c0_100 = arith.constant 0 : index
    %135 = vector.load %arg6[%c3_98, %c0_99, %c0_100] : memref<4x32x8xbf16, #tpu.memory_space<vmem>>, vector<1x32x8xbf16>
    %136 = vector.shape_cast %135 : vector<1x32x8xbf16> to vector<32x8xbf16>
    %cst_101 = arith.constant dense<0.000000e+00> : vector<64x8xf32>
    %137 = tpu.matmul %25, %136, %cst_101 {dimension_numbers = #tpu.dot_dimension_numbers<[1], [0], [0], [1], [0, 0, 1, 1], [], []>} : vector<64x32xbf16>, vector<32x8xbf16>, vector<64x8xf32> -> vector<64x8xf32>
    %c3_102 = arith.constant 3 : index
    %c0_103 = arith.constant 0 : index
    %c0_104 = arith.constant 0 : index
    %138 = vector.load %arg9[%c3_102, %c0_103, %c0_104] : memref<4x1x8xf32, #tpu.memory_space<vmem>>, vector<1x1x8xf32>
    %139 = vector.shape_cast %138 : vector<1x1x8xf32> to vector<1x8xf32>
    %140 = vector.broadcast %139 : vector<1x8xf32> to vector<64x8xf32>
    %141 = arith.addf %137, %140 : vector<64x8xf32>
    %142 = arith.truncf %141 : vector<64x8xf32> to vector<64x8xbf16>
    %cst_105 = arith.constant dense<0.000000e+00> : vector<64x64xf32>
    %143 = tpu.matmul %126, %134, %cst_105 {dimension_numbers = #tpu.dot_dimension_numbers<[1], [1], [0], [0], [0, 0, 1, 0], [], []>} : vector<64x8xbf16>, vector<64x8xbf16>, vector<64x64xf32> -> vector<64x64xf32>
    %cst_106 = arith.constant 0.353553385 : f32
    %144 = vector.broadcast %cst_106 : f32 to vector<64x64xf32>
    %145 = arith.mulf %143, %144 : vector<64x64xf32>
    %c3_107 = arith.constant 3 : index
    %c0_108 = arith.constant 0 : index
    %c0_109 = arith.constant 0 : index
    %146 = vector.load %arg10[%c3_107, %c0_108, %c0_109] : memref<4x64x64xbf16, #tpu.memory_space<vmem>>, vector<1x64x64xbf16>
    %147 = vector.shape_cast %146 : vector<1x64x64xbf16> to vector<64x64xbf16>
    %148 = arith.extf %147 : vector<64x64xbf16> to vector<64x64xf32>
    %149 = arith.addf %145, %148 : vector<64x64xf32>
    %150 = tpu.concatenate %56, %87, %118, %149 in 0 : vector<64x64xf32>, vector<64x64xf32>, vector<64x64xf32>, vector<64x64xf32> -> vector<256x64xf32>
    %cst_110 = arith.constant dense<0xFF800000> : vector<256xf32>
    %151 = vector.multi_reduction <maximumf>, %150, %cst_110 [1] : vector<256x64xf32> to vector<256xf32>
    %152 = vector.shape_cast %151 : vector<256xf32> to vector<256x1xf32>
    %153 = vector.broadcast %152 : vector<256x1xf32> to vector<256x64xf32>
    %154 = arith.subf %150, %153 : vector<256x64xf32>
    %155 = math.exp %154 : vector<256x64xf32>
    %cst_111 = arith.constant dense<0.000000e+00> : vector<256xf32>
    %156 = vector.multi_reduction <add>, %155, %cst_111 [1] : vector<256x64xf32> to vector<256xf32>
    %157 = vector.shape_cast %156 : vector<256xf32> to vector<256x1xf32>
    %158 = tpu.reciprocal %157 {approx = true} : vector<256x1xf32> -> vector<256x1xf32>
    %159 = vector.broadcast %158 : vector<256x1xf32> to vector<256x64xf32>
    %160 = arith.mulf %155, %159 : vector<256x64xf32>
    %161 = arith.truncf %160 : vector<256x64xf32> to vector<256x64xbf16>
    %c0_112 = arith.constant 0 : index
    %c0_113 = arith.constant 0 : index
    %162 = vector.load %arg12[%c0_112, %c0_113] : memref<1x32xf32, #tpu.memory_space<vmem>>, vector<1x32xf32>
    %163 = vector.broadcast %162 : vector<1x32xf32> to vector<64x32xf32>
    %164 = arith.addf %0, %163 : vector<64x32xf32>
    %165 = vector.extract_strided_slice %161 {offsets = [0, 0], sizes = [64, 64], strides = [1, 1]} : vector<256x64xbf16> to vector<64x64xbf16>
    %cst_114 = arith.constant dense<0.000000e+00> : vector<64x8xf32>
    %166 = tpu.matmul %165, %49, %cst_114 {dimension_numbers = #tpu.dot_dimension_numbers<[1], [0], [0], [1], [0, 0, 1, 1], [], []>} : vector<64x64xbf16>, vector<64x8xbf16>, vector<64x8xf32> -> vector<64x8xf32>
    %167 = arith.truncf %166 : vector<64x8xf32> to vector<64x8xbf16>
    %c0_115 = arith.constant 0 : index
    %c0_116 = arith.constant 0 : index
    %c0_117 = arith.constant 0 : index
    %168 = vector.load %arg11[%c0_115, %c0_116, %c0_117] : memref<4x8x32xbf16, #tpu.memory_space<vmem>>, vector<1x8x32xbf16>
    %169 = vector.shape_cast %168 : vector<1x8x32xbf16> to vector<8x32xbf16>
    %cst_118 = arith.constant dense<0.000000e+00> : vector<64x32xf32>
    %170 = tpu.matmul %167, %169, %cst_118 {dimension_numbers = #tpu.dot_dimension_numbers<[1], [0], [0], [1], [0, 0, 1, 1], [], []>} : vector<64x8xbf16>, vector<8x32xbf16>, vector<64x32xf32> -> vector<64x32xf32>
    %171 = arith.addf %164, %170 : vector<64x32xf32>
    %172 = vector.extract_strided_slice %161 {offsets = [64, 0], sizes = [64, 64], strides = [1, 1]} : vector<256x64xbf16> to vector<64x64xbf16>
    %cst_119 = arith.constant dense<0.000000e+00> : vector<64x8xf32>
    %173 = tpu.matmul %172, %80, %cst_119 {dimension_numbers = #tpu.dot_dimension_numbers<[1], [0], [0], [1], [0, 0, 1, 1], [], []>} : vector<64x64xbf16>, vector<64x8xbf16>, vector<64x8xf32> -> vector<64x8xf32>
    %174 = arith.truncf %173 : vector<64x8xf32> to vector<64x8xbf16>
    %c1_120 = arith.constant 1 : index
    %c0_121 = arith.constant 0 : index
    %c0_122 = arith.constant 0 : index
    %175 = vector.load %arg11[%c1_120, %c0_121, %c0_122] : memref<4x8x32xbf16, #tpu.memory_space<vmem>>, vector<1x8x32xbf16>
    %176 = vector.shape_cast %175 : vector<1x8x32xbf16> to vector<8x32xbf16>
    %cst_123 = arith.constant dense<0.000000e+00> : vector<64x32xf32>
    %177 = tpu.matmul %174, %176, %cst_123 {dimension_numbers = #tpu.dot_dimension_numbers<[1], [0], [0], [1], [0, 0, 1, 1], [], []>} : vector<64x8xbf16>, vector<8x32xbf16>, vector<64x32xf32> -> vector<64x32xf32>
    %178 = arith.addf %171, %177 : vector<64x32xf32>
    %179 = vector.extract_strided_slice %161 {offsets = [128, 0], sizes = [64, 64], strides = [1, 1]} : vector<256x64xbf16> to vector<64x64xbf16>
    %cst_124 = arith.constant dense<0.000000e+00> : vector<64x8xf32>
    %180 = tpu.matmul %179, %111, %cst_124 {dimension_numbers = #tpu.dot_dimension_numbers<[1], [0], [0], [1], [0, 0, 1, 1], [], []>} : vector<64x64xbf16>, vector<64x8xbf16>, vector<64x8xf32> -> vector<64x8xf32>
    %181 = arith.truncf %180 : vector<64x8xf32> to vector<64x8xbf16>
    %c2_125 = arith.constant 2 : index
    %c0_126 = arith.constant 0 : index
    %c0_127 = arith.constant 0 : index
    %182 = vector.load %arg11[%c2_125, %c0_126, %c0_127] : memref<4x8x32xbf16, #tpu.memory_space<vmem>>, vector<1x8x32xbf16>
    %183 = vector.shape_cast %182 : vector<1x8x32xbf16> to vector<8x32xbf16>
    %cst_128 = arith.constant dense<0.000000e+00> : vector<64x32xf32>
    %184 = tpu.matmul %181, %183, %cst_128 {dimension_numbers = #tpu.dot_dimension_numbers<[1], [0], [0], [1], [0, 0, 1, 1], [], []>} : vector<64x8xbf16>, vector<8x32xbf16>, vector<64x32xf32> -> vector<64x32xf32>
    %185 = arith.addf %178, %184 : vector<64x32xf32>
    %186 = vector.extract_strided_slice %161 {offsets = [192, 0], sizes = [64, 64], strides = [1, 1]} : vector<256x64xbf16> to vector<64x64xbf16>
    %cst_129 = arith.constant dense<0.000000e+00> : vector<64x8xf32>
    %187 = tpu.matmul %186, %142, %cst_129 {dimension_numbers = #tpu.dot_dimension_numbers<[1], [0], [0], [1], [0, 0, 1, 1], [], []>} : vector<64x64xbf16>, vector<64x8xbf16>, vector<64x8xf32> -> vector<64x8xf32>
    %188 = arith.truncf %187 : vector<64x8xf32> to vector<64x8xbf16>
    %c3_130 = arith.constant 3 : index
    %c0_131 = arith.constant 0 : index
    %c0_132 = arith.constant 0 : index
    %189 = vector.load %arg11[%c3_130, %c0_131, %c0_132] : memref<4x8x32xbf16, #tpu.memory_space<vmem>>, vector<1x8x32xbf16>
    %190 = vector.shape_cast %189 : vector<1x8x32xbf16> to vector<8x32xbf16>
    %cst_133 = arith.constant dense<0.000000e+00> : vector<64x32xf32>
    %191 = tpu.matmul %188, %190, %cst_133 {dimension_numbers = #tpu.dot_dimension_numbers<[1], [0], [0], [1], [0, 0, 1, 1], [], []>} : vector<64x8xbf16>, vector<8x32xbf16>, vector<64x32xf32> -> vector<64x32xf32>
    %192 = arith.addf %185, %191 : vector<64x32xf32>
    %c0_134 = arith.constant 0 : index
    %c0_135 = arith.constant 0 : index
    %193 = vector.load %arg13[%c0_134, %c0_135] : memref<64x32xf32, #tpu.memory_space<vmem>>, vector<64x32xf32>
    tpu.vector_store %arg13[%c0_134, %c0_135], %192 {strides = array<i32>} : memref<64x32xf32, #tpu.memory_space<vmem>>, vector<64x32xf32>,
    return
  }
  func.func @transform_0(%arg0: i32) -> (i32, i32) {
    %c0_i32 = arith.constant 0 : i32
    %c0_i32_0 = arith.constant 0 : i32
    return %arg0, %c0_i32 : i32, i32
  }
  func.func @transform_1(%arg0: i32) -> (i32, i32) {
    %c0_i32 = arith.constant 0 : i32
    %c0_i32_0 = arith.constant 0 : i32
    %c0_i32_1 = arith.constant 0 : i32
    return %c0_i32, %c0_i32_0 : i32, i32
  }
  func.func @transform_2(%arg0: i32) -> (i32, i32) {
    %c0_i32 = arith.constant 0 : i32
    %c0_i32_0 = arith.constant 0 : i32
    %c0_i32_1 = arith.constant 0 : i32
    return %c0_i32, %c0_i32_0 : i32, i32
  }
  func.func @transform_3(%arg0: i32) -> (i32, i32, i32) {
    %c0_i32 = arith.constant 0 : i32
    %c0_i32_0 = arith.constant 0 : i32
    %c0_i32_1 = arith.constant 0 : i32
    %c0_i32_2 = arith.constant 0 : i32
    return %c0_i32, %c0_i32_0, %c0_i32_1 : i32, i32, i32
  }
  func.func @transform_4(%arg0: i32) -> (i32, i32, i32) {
    %c0_i32 = arith.constant 0 : i32
    %c0_i32_0 = arith.constant 0 : i32
    %c0_i32_1 = arith.constant 0 : i32
    %c0_i32_2 = arith.constant 0 : i32
    return %c0_i32, %c0_i32_0, %c0_i32_1 : i32, i32, i32
  }
  func.func @transform_5(%arg0: i32) -> (i32, i32, i32) {
    %c0_i32 = arith.constant 0 : i32
    %c0_i32_0 = arith.constant 0 : i32
    %c0_i32_1 = arith.constant 0 : i32
    %c0_i32_2 = arith.constant 0 : i32
    return %c0_i32, %c0_i32_0, %c0_i32_1 : i32, i32, i32
  }
  func.func @transform_6(%arg0: i32) -> (i32, i32, i32) {
    %c0_i32 = arith.constant 0 : i32
    %c0_i32_0 = arith.constant 0 : i32
    %c0_i32_1 = arith.constant 0 : i32
    %c0_i32_2 = arith.constant 0 : i32
    return %c0_i32, %c0_i32_0, %c0_i32_1 : i32, i32, i32
  }
  func.func @transform_7(%arg0: i32) -> (i32, i32, i32) {
    %c0_i32 = arith.constant 0 : i32
    %c0_i32_0 = arith.constant 0 : i32
    %c0_i32_1 = arith.constant 0 : i32
    %c0_i32_2 = arith.constant 0 : i32
    return %c0_i32, %c0_i32_0, %c0_i32_1 : i32, i32, i32
  }
  func.func @transform_8(%arg0: i32) -> (i32, i32, i32) {
    %c0_i32 = arith.constant 0 : i32
    %c0_i32_0 = arith.constant 0 : i32
    %c0_i32_1 = arith.constant 0 : i32
    %c0_i32_2 = arith.constant 0 : i32
    return %c0_i32, %c0_i32_0, %c0_i32_1 : i32, i32, i32
  }
  func.func @transform_9(%arg0: i32) -> (i32, i32, i32) {
    %c0_i32 = arith.constant 0 : i32
    %c0_i32_0 = arith.constant 0 : i32
    %c0_i32_1 = arith.constant 0 : i32
    %c0_i32_2 = arith.constant 0 : i32
    return %c0_i32, %c0_i32_0, %c0_i32_1 : i32, i32, i32
  }
  func.func @transform_10(%arg0: i32) -> (i32, i32, i32) {
    %c0_i32 = arith.constant 0 : i32
    %c0_i32_0 = arith.constant 0 : i32
    %c0_i32_1 = arith.constant 0 : i32
    %c0_i32_2 = arith.constant 0 : i32
    return %c0_i32, %c0_i32_0, %c0_i32_1 : i32, i32, i32
  }
  func.func @transform_11(%arg0: i32) -> (i32, i32) {
    %c0_i32 = arith.constant 0 : i32
    %c0_i32_0 = arith.constant 0 : i32
    %c0_i32_1 = arith.constant 0 : i32
    return %c0_i32, %c0_i32_0 : i32, i32
  }
  func.func @transform_12(%arg0: i32) -> (i32, i32) {
    %c0_i32 = arith.constant 0 : i32
    %c0_i32_0 = arith.constant 0 : i32
    return %arg0, %c0_i32 : i32, i32
  }
}

</mosaic_0001>

<bundles_post_ra>
// kernel: tpu_custom_call.1
= control target key start
LH: loop header
LB: loop body
LE: loop exit
PB: predicated region body
PF: predicated region fallthrough
CT: control target
= control target key end

     0   :  { %s4362_s21 = smov 0   ;;  %s5375_s0 = inlined_call_operand.vmem [shape: f32[128,32], index: 0, kind: input, shape index: {}]   ;;  %s5376_s1 = inlined_call_operand.vmem [shape: f32[1,32], index: 1, kind: input, shape index: {}]   ;;  %s5377_s2 = inlined_call_operand.vmem [shape: f32[1,32], index: 2, kind: input, shape index: {}]   ;;  %s5378_s3 = inlined_call_operand.vmem [shape: bf16[4,32,8], index: 3, kind: input, shape index: {}]   ;;  %s5379_s4 = inlined_call_operand.vmem [shape: bf16[4,32,8], index: 4, kind: input, shape index: {}]   ;;  %s5380_s5 = inlined_call_operand.vmem [shape: bf16[4,32,8], index: 5, kind: input, shape index: {}]   ;;  %s5381_s6 = inlined_call_operand.vmem [shape: f32[4,1,8], index: 6, kind: input, shape index: {}]   ;;  %s5382_s7 = inlined_call_operand.vmem [shape: f32[4,1,8], index: 7, kind: input, shape index: {}]   ;;  %s5383_s8 = inlined_call_operand.vmem [shape: f32[4,1,8], index: 8, kind: input, shape index: {}]   ;;  %s5384_s9 = inlined_call_operand.vmem [shape: bf16[4,64,64], index: 9, kind: input, shape index: {}]   ;;  %s5385_s10 = inlined_call_operand.vmem [shape: bf16[4,8,32], index: 10, kind: input, shape index: {}]   ;;  %s5386_s11 = inlined_call_operand.vmem [shape: f32[1,32], index: 11, kind: input, shape index: {}]   ;;  %s5387_s12 = inlined_call_operand.vmem [shape: f32[128,32], index: 12, kind: output, shape index: {}]  }
   0x1 LB: > { %s3320_s22 = sadd.s32 4294967295, %s4295_s21   ;;  %p3324_p0 = scmp.ge.s32.totalorder %s4295_s21, 1  ;;  %s4295_s21 = sphi %s4362_s21, %s22_s21  }
   0x2   : > { %p363_p1 = scmp.lt.s32.totalorder %s4295_s21, 3 }
   0x4   : > { %p364_p2 = pnand %p3324_p0, %p363_p1 }
   0x5   : > { %s3325_s23 = sshll.u32 (!%p364_p2), %s3320_s22, 3 }
   0x6   : > { %367 = sbr.rel (%p364_p2) target bundleno = 1846 (0x736), region = 68  ;;  %p406_p3 = scmp.lt.s32.totalorder (!%p364_p2), %s3325_s23, 15 }
   0xb   : > { %s5389_s23 = smov (!%p406_p3, %s3325_s23), 15  ;;  %vm426_vm0 = vcmask 261120   ;;  %v4113_v56 = vld [vmem:[%s5378_s3 + $0x8] sm:$0xff]   ;;  %v4115_v58 = vld [vmem:[%s5378_s3] sm:$0xff]   ;;  %vm854_vm1 = vcmask 64512   ;;  %vm2188_vm2 = vcmask 523264  }
   0xc   : > { %s3326_s24 = sshll.u32 %s5389_s23, 3  ;;  %v4114_v57 = vld [vmem:[%s5379_s4 + $0x8] sm:$0xff]   ;;  %3773 = vmatprep.subr.bf16.mxu0 %v4113_v56  ;;  %v4116_v59 = vld [vmem:[%s5379_s4] sm:$0xff]   ;;  %vm2666_vm3 = vcmask 1043456  }
   0xd   : > { %s4378_s27 = scalar_lea.vmem %s5375_s0, %s3326_s24  ;;  %3785 = vmatprep.subr.bf16.mxu1 %v4114_v57  ;;  %3774 = vmatpush3.bf16.msra.mxu0 %v4113_v56  ;;  %v4451_v60 = vld [vmem:[%s5380_s5 + $0x8] sm:$0xff]   ;;  %s5349_s18 = scalar_lea.vmem %s5387_s12, %s3326_s24 }
   0xe   : > { %v418_v0 = vld [vmem:[%s4378_s27] sm:$0xff]  ;;  %v420_v1 = vld [vmem:[%s4378_s27 + $0x10] sm:$0xff]  ;;  %v419_v2 = vld [vmem:[%s4378_s27 + $0x8] sm:$0xff]  ;;  %3786 = vmatpush3.bf16.msra.mxu1 %v4114_v57  ;;  %3775 = vmatprep.subr.bf16.mxu0 %v4115_v58 }
   0xf   : > { %v427_v3 = vsel %vm426_vm0, %v418_v0, 0.0  ;;  %v433_v4 = vsel %vm426_vm0, %v420_v1, 0.0  ;;  %v421_v5 = vld [vmem:[%s4378_s27 + $0x18] sm:$0xff]  ;;  %v422_v6 = vld [vmem:[%s4378_s27 + $0x20] sm:$0xff]  ;;  %v423_v7 = vld [vmem:[%s4378_s27 + $0x28] sm:$0xff]  ;;  %v430_v8 = vsel %vm426_vm0, %v419_v2, 0.0  ;;  %3787 = vmatprep.subr.bf16.mxu1 %v4116_v59 }
  0x10   : > { %428 = vadd.xlane.f32.xlu0 %v427_v3  ;;  %434 = vadd.xlane.f32.xlu1 %v433_v4  ;;  %v436_v9 = vsel %vm426_vm0, %v421_v5, 0.0  ;;  %v439_v10 = vsel %vm426_vm0, %v422_v6, 0.0  ;;  %v442_v11 = vsel %vm426_vm0, %v423_v7, 0.0  ;;  %v424_v12 = vld [vmem:[%s4378_s27 + $0x30] sm:$0xff]  ;;  %v425_v13 = vld [vmem:[%s4378_s27 + $0x38] sm:$0xff] }
  0x11   : > { %v445_v14 = vsel %vm426_vm0, %v424_v12, 0.0  ;;  %v448_v15 = vsel %vm426_vm0, %v425_v13, 0.0  ;;  %3776 = vmatpush3.bf16.msra.mxu0 %v4115_v58  ;;  %v4119_v58 = vld [vmem:[%s5378_s3 + $0x18] sm:$0xff]  }
  0x12   : > { %3788 = vmatpush3.bf16.msra.mxu1 %v4116_v59  ;;  %3797 = vmatprep.subr.bf16.mxu0 %v4451_v60 }
  0x14   : > { %431 = vadd.xlane.f32.xlu0 %v430_v8  ;;  %437 = vadd.xlane.f32.xlu1 %v436_v9 }
  0x18   : > { %440 = vadd.xlane.f32.xlu0 %v439_v10  ;;  %443 = vadd.xlane.f32.xlu1 %v442_v11 }
  0x1c   : > { %446 = vadd.xlane.f32.xlu0 %v445_v14  ;;  %449 = vadd.xlane.f32.xlu1 %v448_v15 }
  0x99   : > { %v429_v16 = vpop.xlane.xlu0 %428  ;;  %v435_v17 = vpop.xlane.xlu1 %434 }
  0x9a   : > { %v452_v18 = vmul.f32 0.03125, %v429_v16  ;;  %v454_v19 = vmul.f32 0.03125, %v435_v17 }
  0x9c   : > { %v4396_v20 = vsub.f32 %v418_v0, %v452_v18  ;;  %v4398_v21 = vsub.f32 %v420_v1, %v454_v19 }
  0x9d   : > { %v432_v22 = vpop.xlane.xlu0 %431  ;;  %v438_v23 = vpop.xlane.xlu1 %437 }
  0x9e   : > { %v453_v24 = vmul.f32 0.03125, %v432_v22  ;;  %v455_v25 = vmul.f32 0.03125, %v438_v23  ;;  %v468_v26 = vmul.f32 %v4396_v20, %v4396_v20  ;;  %v470_v27 = vmul.f32 %v4398_v21, %v4398_v21 }
  0xa0   : > { %v4404_v28 = vsub.f32 %v419_v2, %v453_v24  ;;  %v4406_v29 = vsub.f32 %v421_v5, %v455_v25  ;;  %v476_v30 = vsel %vm426_vm0, %v468_v26, 0.0  ;;  %v482_v33 = vsel %vm426_vm0, %v470_v27, 0.0  ;;  %v3329_v25 = vld [vmem:[%s5376_s1] ss:$0 sm:$0xff] }
  0xa1   : > { %477 = vadd.xlane.f32.xlu0 %v476_v30  ;;  %v441_v31 = vpop.xlane.xlu0 %440  ;;  %v444_v32 = vpop.xlane.xlu1 %443 }
  0xa2   : > { %v456_v34 = vmul.f32 0.03125, %v441_v31  ;;  %v457_v35 = vmul.f32 0.03125, %v444_v32  ;;  %v469_v36 = vmul.f32 %v4404_v28, %v4404_v28  ;;  %v471_v37 = vmul.f32 %v4406_v29, %v4406_v29  ;;  %v3330_v32 = vld [vmem:[%s5377_s2] ss:$0 sm:$0xff] }
  0xa4   : > { %v4414_v38 = vsub.f32 %v422_v6, %v456_v34  ;;  %v4416_v39 = vsub.f32 %v423_v7, %v457_v35  ;;  %v479_v40 = vsel %vm426_vm0, %v469_v36, 0.0  ;;  %v485_v43 = vsel %vm426_vm0, %v471_v37, 0.0 }
  0xa5   : > { %483 = vadd.xlane.f32.xlu0 %v482_v33  ;;  %480 = vadd.xlane.f32.xlu1 %v479_v40  ;;  %v447_v41 = vpop.xlane.xlu0 %446  ;;  %v450_v42 = vpop.xlane.xlu1 %449 }
  0xa6   : > { %v458_v44 = vmul.f32 0.03125, %v447_v41  ;;  %v459_v45 = vmul.f32 0.03125, %v450_v42  ;;  %v472_v46 = vmul.f32 %v4414_v38, %v4414_v38  ;;  %v473_v47 = vmul.f32 %v4416_v39, %v4416_v39 }
  0xa8   : > { %v4424_v48 = vsub.f32 %v424_v12, %v458_v44  ;;  %v4426_v49 = vsub.f32 %v425_v13, %v459_v45  ;;  %v488_v50 = vsel %vm426_vm0, %v472_v46, 0.0  ;;  %v491_v51 = vsel %vm426_vm0, %v473_v47, 0.0 }
  0xa9   : > { %486 = vadd.xlane.f32.xlu1 %v485_v43  ;;  %489 = vadd.xlane.f32.xlu0 %v488_v50 }
  0xaa   : > { %v474_v52 = vmul.f32 %v4424_v48, %v4424_v48  ;;  %v475_v53 = vmul.f32 %v4426_v49, %v4426_v49 }
  0xac   : > { %v494_v54 = vsel %vm426_vm0, %v474_v52, 0.0  ;;  %v497_v55 = vsel %vm426_vm0, %v475_v53, 0.0  ;;  %v4118_v52 = vld [vmem:[%s5380_s5] sm:$0xff]  }
  0xad   : > { %492 = vadd.xlane.f32.xlu1 %v491_v51  ;;  %495 = vadd.xlane.f32.xlu0 %v494_v54 }
  0xb1   : > { %498 = vadd.xlane.f32.xlu1 %v497_v55 }
 0x12a   : > { %v478_v61 = vpop.xlane.xlu0 %477 }
 0x12b   : > { %v500_v62 = vmul.f32 0.03125, %v478_v61 }
 0x12d   : > { %v508_v63 = vadd.f32 1e-05, %v500_v62  ;;  %v4121_v62 = vld [vmem:[%s5379_s4 + $0x18] sm:$0xff]  }
 0x12e   : > { %v481_v0 = vpop.xlane.xlu1 %480  ;;  %v484_v1 = vpop.xlane.xlu0 %483 }
 0x12f   : > { %4137 = vrsqrt.f32 %v508_v63  ;;  %v501_v2 = vmul.f32 0.03125, %v481_v0  ;;  %v502_v3 = vmul.f32 0.03125, %v484_v1  ;;  %v4122_v63 = vld [vmem:[%s5379_s4 + $0x10] sm:$0xff]  }
 0x131   : > { %v509_v4 = vadd.f32 1e-05, %v501_v2  ;;  %v510_v5 = vadd.f32 1e-05, %v502_v3 }
 0x132   : > { %v487_v6 = vpop.xlane.xlu1 %486  ;;  %v490_v7 = vpop.xlane.xlu0 %489 }
 0x133   : > { %4139 = vrsqrt.f32 %v509_v4  ;;  %v503_v8 = vmul.f32 0.03125, %v487_v6  ;;  %v504_v9 = vmul.f32 0.03125, %v490_v7  ;;  %v4539_v6 = vld [vmem:[%s5381_s6] ss:$0 sm:$0xff] }
 0x134   : > { %4141 = vrsqrt.f32 %v510_v5 }
 0x135   : > { %v511_v10 = vadd.f32 1e-05, %v503_v8  ;;  %v512_v11 = vadd.f32 1e-05, %v504_v9 }
 0x136   : > { %v493_v12 = vpop.xlane.xlu1 %492  ;;  %v496_v13 = vpop.xlane.xlu0 %495 }
 0x137   : > { %4143 = vrsqrt.f32 %v511_v10  ;;  %v505_v14 = vmul.f32 0.03125, %v493_v12  ;;  %v506_v15 = vmul.f32 0.03125, %v496_v13 }
 0x138   : > { %4145 = vrsqrt.f32 %v512_v11 }
 0x139   : > { %v513_v16 = vadd.f32 1e-05, %v505_v14  ;;  %v514_v17 = vadd.f32 1e-05, %v506_v15 }
 0x13a   : > { %v499_v18 = vpop.xlane.xlu1 %498 }
 0x13b   : > { %4147 = vrsqrt.f32 %v513_v16  ;;  %v507_v19 = vmul.f32 0.03125, %v499_v18  ;;  %v3338_v16 = vld [vmem:[%s5382_s7] ss:$0 sm:$0xff] }
 0x13c   : > { %v4138_v22 = vpop.eup %4137  ;;  %4149 = vrsqrt.f32 %v514_v17 }
 0x13d   : > { %v524_v23 = vmul.f32 %v4138_v22, %v4396_v20  ;;  %v515_v24 = vadd.f32 1e-05, %v507_v19 }
 0x13f   : > { %4151 = vrsqrt.f32 %v515_v24  ;;  %v539_v30 = vmul.f32 %v3329_v25, %v524_v23 }
 0x140   : > { %v4140_v26 = vpop.eup %4139 }
 0x141   : > { %v4142_v27 = vpop.eup %4141  ;;  %v525_v31 = vmul.f32 %v4140_v26, %v4404_v28  ;;  %v554_v36 = vadd.f32 %v3330_v32, %v539_v30 }
 0x142   : > { %v526_v33 = vmul.f32 %v4142_v27, %v4398_v21 }
 0x143   : > { %v540_v34 = vmul.f32 %v3329_v25, %v525_v31 }
 0x144   : > { %v4144_v35 = vpop.eup %4143  ;;  %v541_v40 = vmul.f32 %v3329_v25, %v526_v33  ;;  %v3345_v33 = vld [vmem:[%s5383_s8] ss:$0 sm:$0xff] }
 0x145   : > { %v4146_v20 = vpop.eup %4145  ;;  %v555_v37 = vadd.f32 %v3330_v32, %v540_v34  ;;  %v527_v41 = vmul.f32 %v4144_v35, %v4406_v29 }
 0x146   : > { %v528_v42 = vmul.f32 %v4146_v20, %v4414_v38  ;;  %v556_v47 = vadd.f32 %v3330_v32, %v541_v40 }
 0x147   : > { %v4465_v43 = vpack.c.bf16 %v555_v37, %v554_v36  ;;  %v542_v44 = vmul.f32 %v3329_v25, %v527_v41 }
 0x148   : > { %v4148_v28 = vpop.eup %4147  ;;  %v543_v45 = vmul.f32 %v3329_v25, %v528_v42 }
 0x149   : > { %v4150_v46 = vpop.eup %4149  ;;  %v557_v50 = vadd.f32 %v3330_v32, %v542_v44  ;;  %v529_v21 = vmul.f32 %v4148_v28, %v4416_v39  ;;  %3777 = vmatprep.mubr.msk.bf16.mxu0 %vm426_vm0, %v4465_v43  ;;  %3789 = vmatprep.mubr.msk.bf16.mxu1 %vm426_vm0, %v4465_v43 }
 0x14a   : > { %v530_v29 = vmul.f32 %v4150_v46, %v4424_v48  ;;  %v558_v54 = vadd.f32 %v3330_v32, %v543_v45 }
 0x14b   : > { %v4473_v51 = vpack.c.bf16 %v557_v50, %v556_v47  ;;  %v544_v38 = vmul.f32 %v3329_v25, %v529_v21 }
 0x14c   : > { %v4152_v53 = vpop.eup %4151  ;;  %v545_v56 = vmul.f32 %v3329_v25, %v530_v29 }
 0x14d   : > { %v559_v55 = vadd.f32 %v3330_v32, %v544_v38  ;;  %v531_v39 = vmul.f32 %v4152_v53, %v4426_v49  ;;  %3778 = vmatmul.mubr.msk.bf16.vlgmr.msra.gmra.mxu0 %vm426_vm0, %v4473_v51  ;;  %3790 = vmatmul.mubr.msk.bf16.vlgmr.msra.gmra.mxu1 %vm426_vm0, %v4473_v51 }
 0x14e   : > { %3798 = vmatpush3.bf16.msra.mxu0 %v4451_v60  ;;  %v560_v59 = vadd.f32 %v3330_v32, %v545_v56  ;;  %v4120_v60 = vld [vmem:[%s5378_s3 + $0x10] sm:$0xff]  }
 0x14f   : > { %v4484_v48 = vpack.c.bf16 %v559_v55, %v558_v54  ;;  %v546_v57 = vmul.f32 %v3329_v25, %v531_v39  ;;  %3799 = vmatprep.subr.bf16.mxu0 %v4118_v52 }
 0x151   : > { %v561_v61 = vadd.f32 %v3330_v32, %v546_v57  ;;  %3781 = vmatprep.mubr.msk.bf16.mxu0 %vm426_vm0, %v4484_v48  ;;  %3793 = vmatprep.mubr.msk.bf16.mxu1 %vm426_vm0, %v4484_v48 }
 0x152   : > { %3800 = vmatpush3.bf16.msra.mxu0 %v4118_v52 }
 0x153   : > { %v4493_v49 = vpack.c.bf16 %v561_v61, %v560_v59  ;;  %3825 = vmatprep.subr.bf16.mxu0 %v4119_v58 }
 0x155   : > { %3782 = vmatmul.mubr.msk.bf16.gmra.mxu0 %vm426_vm0, %v4493_v49  ;;  %3794 = vmatmul.mubr.msk.bf16.gmra.mxu1 %vm426_vm0, %v4493_v49 }
 0x156   : > { %3801 = vmatprep.mubr.msk.bf16.mxu0 %vm426_vm0, %v4465_v43 }
 0x15d   : > { %3802 = vmatmul.mubr.msk.bf16.vlgmr.msra.gmra.mxu0 %vm426_vm0, %v4473_v51 }
 0x15e   : > { %3805 = vmatprep.mubr.msk.bf16.mxu0 %vm426_vm0, %v4484_v48  ;;  %3826 = vmatpush3.bf16.msra.mxu0 %v4119_v58 }
 0x15f   : > { %3827 = vmatprep.subr.bf16.mxu0 %v4120_v60 }
 0x162   : > { %3828 = vmatpush3.bf16.msra.mxu0 %v4120_v60 }
 0x163   : > { %3837 = vmatprep.subr.bf16.mxu0 %v4121_v62 }
 0x165   : > { %3806 = vmatmul.mubr.msk.bf16.gmra.mxu0 %vm426_vm0, %v4493_v49 }
 0x166   : > { %3829 = vmatprep.mubr.msk.bf16.mxu0 %vm426_vm0, %v4465_v43 }
 0x16d   : > { %3830 = vmatmul.mubr.msk.bf16.vlgmr.msra.gmra.mxu0 %vm426_vm0, %v4473_v51 }
 0x16e   : > { %3833 = vmatprep.mubr.msk.bf16.mxu0 %vm426_vm0, %v4484_v48  ;;  %3838 = vmatpush3.bf16.msra.mxu0 %v4121_v62 }
 0x16f   : > { %3839 = vmatprep.subr.bf16.mxu0 %v4122_v63 }
 0x172   : > { %3840 = vmatpush3.bf16.msra.mxu0 %v4122_v63 }
 0x175   : > { %3834 = vmatmul.mubr.msk.bf16.gmra.mxu0 %vm426_vm0, %v4493_v49 }
 0x176   : > { %3841 = vmatprep.mubr.msk.bf16.mxu0 %vm426_vm0, %v4465_v43 }
 0x17d   : > { %3842 = vmatmul.mubr.msk.bf16.vlgmr.msra.gmra.mxu0 %vm426_vm0, %v4473_v51 }
 0x17e   : > { %3845 = vmatprep.mubr.msk.bf16.mxu0 %vm426_vm0, %v4484_v48 }
 0x185   : > { %3846 = vmatmul.mubr.msk.bf16.gmra.mxu0 %vm426_vm0, %v4493_v49 }
 0x20d   : > { %v4532_v0 = vpop.f32.mrf.mxu0  ;;  %v3791_v1 = vpop.f32.mrf.mxu1 }
 0x20e   : > { %v736_v41 = vadd.f32 %v3791_v1, %v3338_v16  ;;  %v4578_v1 = vld [vmem:[%s5381_s6 + $0x1] ss:$0 sm:$0xff] }
 0x20f   : > { %v635_v2 = vpop.f32.mrf.mxu0  ;;  %v727_v3 = vpop.f32.mrf.mxu1 }
 0x210   : > { %v636_v9 = vadd.f32 %v4539_v6, %v635_v2  ;;  %v728_v55 = vadd.f32 %v3338_v16, %v727_v3 }
 0x211   : > { %v4534_v4 = vpop.f32.mrf.mxu0  ;;  %v3792_v5 = vpop.f32.mrf.mxu1 }
 0x212   : > { %v739_v20 = vadd.f32 %v3792_v5, %v3338_v16 }
 0x213   : > { %v638_v7 = vpop.f32.mrf.mxu0  ;;  %v730_v8 = vpop.f32.mrf.mxu1 }
 0x214   : > { %v639_v10 = vadd.f32 %v4539_v6, %v638_v7  ;;  %v759_v46 = vpack.c.bf16 %v739_v20, %v736_v41  ;;  %v731_v38 = vadd.f32 %v3338_v16, %v730_v8  ;;  %v4123_v7 = vld [vmem:[%s5380_s5 + $0x18] sm:$0xff]   ;;  %v4126_v41 = vld [vmem:[%s5378_s3 + $0x20] sm:$0xff]  }
 0x215   : > { %v4543_v11 = vpop.f32.mrf.mxu0  ;;  %v3795_v12 = vpop.f32.mrf.mxu1 }
 0x216   : > { %v666_v13 = vpack.c.bf16 %v639_v10, %v636_v9  ;;  %v752_v19 = vadd.f32 %v3795_v12, %v3338_v16  ;;  %v758_v59 = vpack.c.bf16 %v731_v38, %v728_v55  ;;  %v871_v60 = vsel %vm854_vm1, %v759_v46, 0 }
 0x217   : > { %v4545_v14 = vpop.f32.mrf.mxu0  ;;  %v743_v15 = vpop.f32.mrf.mxu1 }
 0x218   : > { %3817 = vmatprep.mubr.msk.bf16.mxu1 %vm854_vm1, %v666_v13  ;;  %v744_v25 = vadd.f32 %v3338_v16, %v743_v15  ;;  %v868_v10 = vsel %vm854_vm1, %v758_v59, 0  ;;  %v647_v13 = vadd.f32 %v4534_v4, %v4539_v6  ;;  %v4124_v4 = vld [vmem:[%s5380_s5 + $0x10] sm:$0xff]  }
 0x219   : > { %v4551_v17 = vpop.f32.mrf.mxu0  ;;  %v3796_v18 = vpop.f32.mrf.mxu1 }
 0x21a   : > { %v755_v22 = vadd.f32 %v3796_v18, %v3338_v16  ;;  %v644_v18 = vadd.f32 %v4532_v0, %v4539_v6  ;;  %v663_v0 = vadd.f32 %v4551_v17, %v4539_v6  ;;  %v3373_v17 = vld [vmem:[%s5382_s7 + $0x1] ss:$0 sm:$0xff] }
 0x21b   : > { %v654_v23 = vpop.f32.mrf.mxu0  ;;  %v746_v24 = vpop.f32.mrf.mxu1 }
 0x21c   : > { %v761_v26 = vpack.c.bf16 %v755_v22, %v752_v19  ;;  %v747_v27 = vadd.f32 %v3338_v16, %v746_v24  ;;  %v655_v15 = vadd.f32 %v4539_v6, %v654_v23  ;;  %v652_v19 = vadd.f32 %v4539_v6, %v4545_v14  ;;  %v4125_v14 = vld [vmem:[%s5378_s3 + $0x28] sm:$0xff]  }
 0x21d   : > { %v3803_v30 = vpop.f32.mrf.mxu0  ;;  %v667_v24 = vpack.c.bf16 %v647_v13, %v644_v18  ;;  %v3539_v13 = vld [vmem:[%s5384_s9] sm:$0xff]  }
 0x21e   : > { %v760_v31 = vpack.c.bf16 %v747_v27, %v744_v25  ;;  %4085 = vmatprep.subr.msk.bf16.mxu1 %vm854_vm1, %v761_v26  ;;  %v877_v32 = vsel %vm854_vm1, %v761_v26, 0  ;;  %v828_v36 = vadd.f32 %v3803_v30, %v3345_v33  ;;  %v668_v25 = vpack.c.bf16 %v655_v15, %v652_v19 }
 0x21f   : > { %v819_v34 = vpop.f32.mrf.mxu0  ;;  %3810 = vmatpush3.bf16.xpose.msra.mxu1 %v877_v32  ;;  %v660_v30 = vadd.f32 %v4543_v11, %v4539_v6  ;;  %v3540_v18 = vunpack.c.l.bf16 %v3539_v13 }
 0x220   : > { %4086 = vmatprep.subr.msk.bf16.mxu1 %vm854_vm1, %v760_v31  ;;  %v820_v42 = vadd.f32 %v3345_v33, %v819_v34  ;;  %v874_v50 = vsel %vm854_vm1, %v760_v31, 0 }
 0x221   : > { %v3804_v35 = vpop.f32.mrf.mxu0  ;;  %v669_v32 = vpack.c.bf16 %v663_v0, %v660_v30  ;;  %v3603_v30 = vld [vmem:[%s5384_s9 + $0x10] sm:$0xff]  }
 0x222   : > { %v831_v37 = vadd.f32 %v3804_v35, %v3345_v33 }
 0x223   : > { %v822_v40 = vpop.f32.mrf.mxu0 }
 0x224   : > { %v4559_v44 = vpack.c.bf16 %v831_v37, %v828_v36  ;;  %v823_v28 = vadd.f32 %v3345_v33, %v822_v40 }
 0x225   : > { %v3807_v45 = vpop.f32.mrf.mxu0 }
 0x226   : > { %v4561_v47 = vpack.c.bf16 %v823_v28, %v820_v42  ;;  %v844_v52 = vadd.f32 %v3807_v45, %v3345_v33  ;;  %v4127_v45 = vld [vmem:[%s5379_s4 + $0x28] sm:$0xff]  }
 0x227   : > { %v835_v21 = vpop.f32.mrf.mxu0  ;;  %3812 = vmatpush3.bf16.xpose.msra.mxu1 %v874_v50 }
 0x228   : > { %4087 = vmatprep.subr.msk.bf16.mxu1 %vm854_vm1, %v759_v46  ;;  %v836_v56 = vadd.f32 %v3345_v33, %v835_v21 }
 0x229   : > { %v3808_v29 = vpop.f32.mrf.mxu0 }
 0x22a   : > { %v847_v53 = vadd.f32 %v3808_v29, %v3345_v33 }
 0x22b   : > { %v838_v54 = vpop.f32.mrf.mxu0 }
 0x22c   : > { %v4565_v39 = vpack.c.bf16 %v847_v53, %v844_v52  ;;  %v839_v57 = vadd.f32 %v3345_v33, %v838_v54  ;;  %v4128_v53 = vld [vmem:[%s5379_s4 + $0x20] sm:$0xff]  }
 0x22d   : > { %v4567_v58 = vpop.f32.mrf.mxu0 }
 0x22e   : > { %v4569_v61 = vpack.c.bf16 %v839_v57, %v836_v56  ;;  %v4129_v56 = vld [vmem:[%s5380_s5 + $0x28] sm:$0xff]  }
 0x22f   : > { %3814 = vmatpush3.bf16.xpose.msra.mxu1 %v871_v60  ;;  %v1035_v62 = vpop.f32.mrf.mxu0 }
 0x230   : > { %4088 = vmatprep.subr.msk.bf16.mxu1 %vm854_vm1, %v758_v59  ;;  %v1036_v3 = vadd.f32 %v4578_v1, %v1035_v62  ;;  %v1044_v62 = vadd.f32 %v4567_v58, %v4578_v1 }
 0x231   : > { %v4573_v63 = vpop.f32.mrf.mxu0 }
 0x232   : > { %v1047_v59 = vadd.f32 %v4573_v63, %v4578_v1  ;;  %v4131_v63 = vld [vmem:[%s5378_s3 + $0x38] sm:$0xff]  }
 0x233   : > { %v1038_v2 = vpop.f32.mrf.mxu0 }
 0x234   : > { %v1039_v5 = vadd.f32 %v4578_v1, %v1038_v2 }
 0x235   : > { %v4585_v8 = vpop.f32.mrf.mxu0 }
 0x236   : > { %v1066_v9 = vpack.c.bf16 %v1039_v5, %v1036_v3  ;;  %v1067_v3 = vpack.c.bf16 %v1047_v59, %v1044_v62 }
 0x237   : > { %3816 = vmatpush3.bf16.xpose.msra.mxu1 %v868_v10  ;;  %v4588_v12 = vpop.f32.mrf.mxu0 }
 0x238   : > { %3869 = vmatprep.mubr.msk.bf16.mxu0 %vm854_vm1, %v1066_v9  ;;  %3849 = vmatprep.subr.bf16.mxu1 %v4123_v7  ;;  %v1052_v2 = vadd.f32 %v4578_v1, %v4588_v12  ;;  %v1060_v9 = vadd.f32 %v4585_v8, %v4578_v1  ;;  %v4132_v12 = vld [vmem:[%s5378_s3 + $0x30] sm:$0xff]  }
 0x239   : > { %v4594_v16 = vpop.f32.mrf.mxu0  ;;  %v4134_v8 = vld [vmem:[%s5379_s4 + $0x30] sm:$0xff]  }
 0x23a   : > { %v1063_v58 = vadd.f32 %v4594_v16, %v4578_v1  ;;  %v3602_v16 = vld [vmem:[%s5384_s9 + $0x8] sm:$0xff]  }
 0x23b   : > { %v4600_v22 = vpop.f32.mrf.mxu0 }
 0x23c   : > { %v1055_v60 = vadd.f32 %v4578_v1, %v4600_v22  ;;  %v1069_v10 = vpack.c.bf16 %v1063_v58, %v1060_v9  ;;  %v4133_v1 = vld [vmem:[%s5379_s4 + $0x38] sm:$0xff]  }
 0x23d   : > { %v3843_v26 = vpop.f32.mrf.mxu0 }
 0x23e   : > { %3818 = vmatmul.mubr.msk.bf16.vlgmr.msra.gmra.mxu1 %vm854_vm1, %v667_v24  ;;  %v1138_v50 = vadd.f32 %v3843_v26, %v3373_v17  ;;  %v1068_v5 = vpack.c.bf16 %v1055_v60, %v1052_v2 }
 0x23f   : > { %3821 = vmatprep.mubr.msk.bf16.mxu1 %vm854_vm1, %v668_v25  ;;  %v1129_v23 = vpop.f32.mrf.mxu0  ;;  %3850 = vmatpush3.bf16.msra.mxu1 %v4123_v7  ;;  %v4130_v7 = vld [vmem:[%s5380_s5 + $0x20] sm:$0xff]  }
 0x240   : > { %3851 = vmatprep.subr.bf16.mxu1 %v4124_v4  ;;  %v1130_v52 = vadd.f32 %v3373_v17, %v1129_v23  ;;  %v3541_v23 = vunpack.c.h.bf16 %v3539_v13 }
 0x241   : > { %v3844_v27 = vpop.f32.mrf.mxu0 }
 0x242   : > { %v1141_v46 = vadd.f32 %v3844_v27, %v3373_v17  ;;  %v3545_v27 = vunpack.c.h.bf16 %v3602_v16 }
 0x243   : > { %v1132_v31 = vpop.f32.mrf.mxu0  ;;  %3852 = vmatpush3.bf16.msra.mxu1 %v4124_v4  ;;  %v3544_v4 = vunpack.c.l.bf16 %v3602_v16 }
 0x244   : > { %3877 = vmatprep.subr.bf16.mxu1 %v4125_v14  ;;  %v1161_v21 = vpack.c.bf16 %v1141_v46, %v1138_v50  ;;  %v1133_v38 = vadd.f32 %v3373_v17, %v1132_v31  ;;  %v3549_v46 = vunpack.c.h.bf16 %v3603_v30 }
 0x245   : > { %v3847_v33 = vpop.f32.mrf.mxu0 }
 0x246   : > { %3822 = vmatmul.mubr.msk.bf16.gmra.mxu1 %vm854_vm1, %v669_v32  ;;  %v1154_v20 = vadd.f32 %v3847_v33, %v3373_v17  ;;  %v1160_v54 = vpack.c.bf16 %v1133_v38, %v1130_v52  ;;  %v1274_v55 = vsel %vm854_vm1, %v1161_v21, 0 }
 0x247   : > { %v1145_v34 = vpop.f32.mrf.mxu0  ;;  %3853 = vmatprep.mubr.msk.bf16.mxu1 %vm426_vm0, %v4465_v43 }
 0x248   : > { %v1146_v6 = vadd.f32 %v3373_v17, %v1145_v34  ;;  %v1271_v57 = vsel %vm854_vm1, %v1160_v54, 0  ;;  %v3604_v34 = vld [vmem:[%s5384_s9 + $0x18] sm:$0xff]  }
 0x249   : > { %v3848_v35 = vpop.f32.mrf.mxu0 }
 0x24a   : > { %v1157_v36 = vadd.f32 %v3848_v35, %v3373_v17 }
 0x24b   : > { %v1148_v37 = vpop.f32.mrf.mxu0 }
 0x24c   : > { %v1163_v11 = vpack.c.bf16 %v1157_v36, %v1154_v20  ;;  %v1149_v40 = vadd.f32 %v3373_v17, %v1148_v37  ;;  %v3548_v20 = vunpack.c.l.bf16 %v3603_v30 }
 0x24e   : > { %v1162_v42 = vpack.c.bf16 %v1149_v40, %v1146_v6  ;;  %3854 = vmatmul.mubr.msk.bf16.vlgmr.msra.gmra.mxu1 %vm426_vm0, %v4473_v51  ;;  %4089 = vmatprep.subr.msk.bf16.mxu0 %vm854_vm1, %v1163_v11  ;;  %v1280_v28 = vsel %vm854_vm1, %v1163_v11, 0  ;;  %v3552_v6 = vunpack.c.l.bf16 %v3604_v34 }
 0x24f   : > { %3857 = vmatprep.mubr.msk.bf16.mxu1 %vm426_vm0, %v4484_v48  ;;  %3862 = vmatpush3.bf16.xpose.msra.mxu0 %v1280_v28 }
 0x250   : > { %4090 = vmatprep.subr.msk.bf16.mxu0 %vm854_vm1, %v1162_v42  ;;  %3878 = vmatpush3.bf16.msra.mxu1 %v4125_v14  ;;  %v1277_v29 = vsel %vm854_vm1, %v1162_v42, 0 }
 0x251   : > { %3879 = vmatprep.subr.bf16.mxu1 %v4126_v41 }
 0x254   : > { %3880 = vmatpush3.bf16.msra.mxu1 %v4126_v41 }
 0x255   : > { %3889 = vmatprep.subr.bf16.mxu1 %v4127_v45 }
 0x256   : > { %3858 = vmatmul.mubr.msk.bf16.gmra.mxu1 %vm426_vm0, %v4493_v49 }
 0x257   : > { %3864 = vmatpush3.bf16.xpose.msra.mxu0 %v1277_v29  ;;  %3881 = vmatprep.mubr.msk.bf16.mxu1 %vm426_vm0, %v4465_v43  ;;  %v3553_v29 = vunpack.c.h.bf16 %v3604_v34 }
 0x258   : > { %4091 = vmatprep.subr.msk.bf16.mxu0 %vm854_vm1, %v1161_v21 }
 0x25e   : > { %3882 = vmatmul.mubr.msk.bf16.vlgmr.msra.gmra.mxu1 %vm426_vm0, %v4473_v51 }
 0x25f   : > { %3866 = vmatpush3.bf16.xpose.msra.mxu0 %v1274_v55  ;;  %3885 = vmatprep.mubr.msk.bf16.mxu1 %vm426_vm0, %v4484_v48 }
 0x260   : > { %4092 = vmatprep.subr.msk.bf16.mxu0 %vm854_vm1, %v1160_v54  ;;  %3890 = vmatpush3.bf16.msra.mxu1 %v4127_v45 }
 0x261   : > { %3891 = vmatprep.subr.bf16.mxu1 %v4128_v53 }
 0x264   : > { %3892 = vmatpush3.bf16.msra.mxu1 %v4128_v53 }
 0x266   : > { %3886 = vmatmul.mubr.msk.bf16.gmra.mxu1 %vm426_vm0, %v4493_v49 }
 0x267   : > { %3868 = vmatpush3.bf16.xpose.msra.mxu0 %v1271_v57  ;;  %3893 = vmatprep.mubr.msk.bf16.mxu1 %vm426_vm0, %v4465_v43  ;;  %v3385_v57 = vld [vmem:[%s5383_s8 + $0x1] ss:$0 sm:$0xff] }
 0x268   : > { %3901 = vmatprep.subr.bf16.mxu0 %v4129_v56 }
 0x26e   : > { %3870 = vmatmul.mubr.msk.bf16.vlgmr.msra.gmra.mxu0 %vm854_vm1, %v1067_v3  ;;  %3894 = vmatmul.mubr.msk.bf16.vlgmr.msra.gmra.mxu1 %vm426_vm0, %v4473_v51 }
 0x26f   : > { %3873 = vmatprep.mubr.msk.bf16.mxu0 %vm854_vm1, %v1068_v5  ;;  %3897 = vmatprep.mubr.msk.bf16.mxu1 %vm426_vm0, %v4484_v48 }
 0x270   : > { %3902 = vmatpush3.bf16.msra.mxu0 %v4129_v56 }
 0x271   : > { %3903 = vmatprep.subr.bf16.mxu0 %v4130_v7 }
 0x274   : > { %3904 = vmatpush3.bf16.msra.mxu0 %v4130_v7 }
 0x275   : > { %3929 = vmatprep.subr.bf16.mxu0 %v4131_v63 }
 0x276   : > { %3874 = vmatmul.mubr.msk.bf16.gmra.mxu0 %vm854_vm1, %v1069_v10  ;;  %3898 = vmatmul.mubr.msk.bf16.gmra.mxu1 %vm426_vm0, %v4493_v49 }
 0x277   : > { %3905 = vmatprep.mubr.msk.bf16.mxu0 %vm426_vm0, %v4465_v43 }
 0x27e   : > { %3906 = vmatmul.mubr.msk.bf16.vlgmr.msra.gmra.mxu0 %vm426_vm0, %v4473_v51 }
 0x27f   : > { %3909 = vmatprep.mubr.msk.bf16.mxu0 %vm426_vm0, %v4484_v48  ;;  %3930 = vmatpush3.bf16.msra.mxu0 %v4131_v63 }
 0x280   : > { %3931 = vmatprep.subr.bf16.mxu0 %v4132_v12 }
 0x283   : > { %3932 = vmatpush3.bf16.msra.mxu0 %v4132_v12 }
 0x284   : > { %3941 = vmatprep.subr.bf16.mxu0 %v4133_v1 }
 0x286   : > { %3910 = vmatmul.mubr.msk.bf16.gmra.mxu0 %vm426_vm0, %v4493_v49 }
 0x287   : > { %3933 = vmatprep.mubr.msk.bf16.mxu0 %vm426_vm0, %v4465_v43 }
 0x28e   : > { %3934 = vmatmul.mubr.msk.bf16.vlgmr.msra.gmra.mxu0 %vm426_vm0, %v4473_v51 }
 0x28f   : > { %3937 = vmatprep.mubr.msk.bf16.mxu0 %vm426_vm0, %v4484_v48  ;;  %3942 = vmatpush3.bf16.msra.mxu0 %v4133_v1 }
 0x290   : > { %3943 = vmatprep.subr.bf16.mxu0 %v4134_v8 }
 0x293   : > { %3944 = vmatpush3.bf16.msra.mxu0 %v4134_v8 }
 0x296   : > { %3938 = vmatmul.mubr.msk.bf16.gmra.mxu0 %vm426_vm0, %v4493_v49 }
 0x297   : > { %3945 = vmatprep.mubr.msk.bf16.mxu0 %vm426_vm0, %v4465_v43 }
 0x29e   : > { %3946 = vmatmul.mubr.msk.bf16.vlgmr.msra.gmra.mxu0 %vm426_vm0, %v4473_v51 }
 0x29f   : > { %3949 = vmatprep.mubr.msk.bf16.mxu0 %vm426_vm0, %v4484_v48 }
 0x2a6   : > { %3950 = vmatmul.mubr.msk.bf16.gmra.mxu0 %vm426_vm0, %v4493_v49 }
 0x2fe   : > { %v3819_v15 = vpop.f32.mrf.mxu1 }
 0x2ff   : > { %v946_v22 = vmul.f32 0.35355338, %v3819_v15 }
 0x300   : > { %v913_v19 = vpop.f32.mrf.mxu1 }
 0x301   : > { %v944_v24 = vmul.f32 0.35355338, %v913_v19  ;;  %v4729_v33 = vadd.f32 %v3544_v4, %v946_v22 }
 0x302   : > { %v3820_v25 = vpop.f32.mrf.mxu1 }
 0x303   : > { %v4722_v26 = vadd.f32 %v3540_v18, %v944_v24  ;;  %v947_v0 = vmul.f32 0.35355338, %v3820_v25  ;;  %v2195_v41 = vsel %vm2188_vm2, %v4729_v33, -inf }
 0x304   : > { %v916_v14 = vpop.f32.mrf.mxu1 }
 0x305   : > { %v945_v31 = vmul.f32 0.35355338, %v916_v14  ;;  %v2189_v32 = vsel %vm2188_vm2, %v4722_v26, -inf  ;;  %v4736_v37 = vadd.f32 %v3545_v27, %v947_v0  ;;  %v4778_v27 = vld [vmem:[%s5381_s6 + $0x2] ss:$0 sm:$0xff] }
 0x306   : > { %2190 = vmax.xlane.f32.xlu0 %v2189_v32  ;;  %v3823_v17 = vpop.f32.mrf.mxu1 }
 0x307   : > { %v4734_v35 = vadd.f32 %v3541_v23, %v945_v31  ;;  %v950_v11 = vmul.f32 0.35355338, %v3823_v17  ;;  %v2198_v21 = vsel %vm2188_vm2, %v4736_v37, -inf }
 0x308   : > { %v929_v36 = vpop.f32.mrf.mxu1 }
 0x309   : > { %v948_v40 = vmul.f32 0.35355338, %v929_v36  ;;  %v2192_v42 = vsel %vm2188_vm2, %v4734_v35, -inf  ;;  %v4748_v54 = vadd.f32 %v3552_v6, %v950_v11  ;;  %v3605_v11 = vld [vmem:[%s5384_s9 + $0x20] sm:$0xff]  }
 0x30a   : > { %2196 = vmax.xlane.f32.xlu0 %v2195_v41  ;;  %2193 = vmax.xlane.f32.xlu1 %v2192_v42  ;;  %v3824_v28 = vpop.f32.mrf.mxu1  ;;  %v3606_v42 = vld [vmem:[%s5384_s9 + $0x28] sm:$0xff]  }
 0x30b   : > { %v4742_v45 = vadd.f32 %v3548_v20, %v948_v40  ;;  %v951_v38 = vmul.f32 0.35355338, %v3824_v28  ;;  %v2207_v60 = vsel %vm2188_vm2, %v4748_v54, -inf  ;;  %v3556_v28 = vunpack.c.l.bf16 %v3605_v11 }
 0x30c   : > { %v932_v50 = vpop.f32.mrf.mxu1 }
 0x30d   : > { %v949_v52 = vmul.f32 0.35355338, %v932_v50  ;;  %v2201_v53 = vsel %vm2188_vm2, %v4742_v45, -inf  ;;  %v4759_v2 = vadd.f32 %v3553_v29, %v951_v38  ;;  %v3560_v38 = vunpack.c.l.bf16 %v3606_v42 }
 0x30e   : > { %2199 = vmax.xlane.f32.xlu1 %v2198_v21  ;;  %2202 = vmax.xlane.f32.xlu0 %v2201_v53  ;;  %v3855_v55 = vpop.f32.mrf.mxu1 }
 0x30f   : > { %v4750_v56 = vadd.f32 %v3549_v46, %v949_v52  ;;  %v1232_v5 = vadd.f32 %v3855_v55, %v3385_v57  ;;  %v2210_v12 = vsel %vm2188_vm2, %v4759_v2, -inf }
 0x310   : > { %v1223_v59 = vpop.f32.mrf.mxu1 }
 0x311   : > { %v2204_v62 = vsel %vm2188_vm2, %v4750_v56, -inf  ;;  %v1224_v63 = vadd.f32 %v3385_v57, %v1223_v59 }
 0x312   : > { %2208 = vmax.xlane.f32.xlu0 %v2207_v60  ;;  %v3856_v3 = vpop.f32.mrf.mxu1  ;;  %2205 = vmax.xlane.f32.xlu1 %v2204_v62 }
 0x313   : > { %v1235_v7 = vadd.f32 %v3856_v3, %v3385_v57  ;;  %v3607_v3 = vld [vmem:[%s5384_s9 + $0x30] sm:$0xff]  }
 0x314   : > { %v1226_v58 = vpop.f32.mrf.mxu1 }
 0x315   : > { %v4761_v9 = vpack.c.bf16 %v1235_v7, %v1232_v5  ;;  %v1227_v10 = vadd.f32 %v3385_v57, %v1226_v58  ;;  %v3561_v5 = vunpack.c.h.bf16 %v3606_v42 }
 0x316   : > { %v3859_v1 = vpop.f32.mrf.mxu1  ;;  %2211 = vmax.xlane.f32.xlu1 %v2210_v12 }
 0x317   : > { %v4765_v8 = vpack.c.bf16 %v1227_v10, %v1224_v63  ;;  %v1248_v16 = vadd.f32 %v3859_v1, %v3385_v57  ;;  %v3608_v10 = vld [vmem:[%s5384_s9 + $0x38] sm:$0xff]  }
 0x318   : > { %v1239_v13 = vpop.f32.mrf.mxu1 }
 0x319   : > { %v1240_v22 = vadd.f32 %v3385_v57, %v1239_v13 }
 0x31a   : > { %v3860_v15 = vpop.f32.mrf.mxu1 }
 0x31b   : > { %v1251_v18 = vadd.f32 %v3860_v15, %v3385_v57  ;;  %v3564_v15 = vunpack.c.l.bf16 %v3607_v3 }
 0x31c   : > { %v1242_v19 = vpop.f32.mrf.mxu1 }
 0x31d   : > { %v4767_v24 = vpack.c.bf16 %v1251_v18, %v1248_v16  ;;  %v1243_v4 = vadd.f32 %v3385_v57, %v1242_v19  ;;  %v3557_v57 = vunpack.c.h.bf16 %v3605_v11 }
 0x31e   : > { %v4769_v25 = vpop.f32.mrf.mxu1 }
 0x31f   : > { %v4771_v23 = vpack.c.bf16 %v1243_v4, %v1240_v22  ;;  %v3568_v4 = vunpack.c.l.bf16 %v3608_v10 }
 0x320   : > { %v1439_v0 = vpop.f32.mrf.mxu1 }
 0x321   : > { %v1440_v31 = vadd.f32 %v4778_v27, %v1439_v0 }
 0x322   : > { %v4773_v14 = vpop.f32.mrf.mxu1 }
 0x324   : > { %v1442_v30 = vpop.f32.mrf.mxu1 }
 0x325   : > { %v1443_v32 = vadd.f32 %v4778_v27, %v1442_v30 }
 0x326   : > { %v4782_v34 = vpop.f32.mrf.mxu1 }
 0x327   : > { %v1470_v17 = vpack.c.bf16 %v1443_v32, %v1440_v31  ;;  %v3421_v32 = vld [vmem:[%s5382_s7 + $0x2] ss:$0 sm:$0xff] }
 0x328   : > { %v4784_v20 = vpop.f32.mrf.mxu1 }
 0x329   : > { %3921 = vmatprep.mubr.msk.bf16.mxu1 %vm854_vm1, %v1470_v17 }
 0x32a   : > { %v4787_v36 = vpop.f32.mrf.mxu1 }
 0x32c   : > { %v4789_v6 = vpop.f32.mrf.mxu1 }
 0x32e   : > { %v3871_v40 = vpop.f32.mrf.mxu0  ;;  %v4794_v41 = vpop.f32.mrf.mxu1 }
 0x32f   : > { %v1349_v21 = vmul.f32 0.35355338, %v3871_v40  ;;  %v3569_v40 = vunpack.c.h.bf16 %v3608_v10 }
 0x330   : > { %v1316_v46 = vpop.f32.mrf.mxu0  ;;  %v4799_v50 = vpop.f32.mrf.mxu1 }
 0x331   : > { %v1347_v29 = vmul.f32 0.35355338, %v1316_v46  ;;  %v4812_v63 = vadd.f32 %v3560_v38, %v1349_v21  ;;  %v3565_v21 = vunpack.c.h.bf16 %v3607_v3 }
 0x332   : > { %v3872_v52 = vpop.f32.mrf.mxu0  ;;  %v4801_v53 = vpop.f32.mrf.mxu1 }
 0x333   : > { %v4803_v55 = vadd.f32 %v3556_v28, %v1347_v29  ;;  %v1350_v59 = vmul.f32 0.35355338, %v3872_v52  ;;  %v2219_v30 = vsel %vm2188_vm2, %v4812_v63, -inf }
 0x334   : > { %v1319_v60 = vpop.f32.mrf.mxu0  ;;  %v4805_v62 = vpop.f32.mrf.mxu1 }
 0x335   : > { %v1348_v7 = vmul.f32 0.35355338, %v1319_v60  ;;  %v2213_v58 = vsel %vm2188_vm2, %v4803_v55, -inf  ;;  %v4819_v22 = vadd.f32 %v3561_v5, %v1350_v59  ;;  %v3433_v59 = vld [vmem:[%s5383_s8 + $0x2] ss:$0 sm:$0xff] }
 0x336   : > { %v3875_v12 = vpop.f32.mrf.mxu0  ;;  %2214 = vmax.xlane.f32.xlu0 %v2213_v58  ;;  %v3899_v1 = vpop.f32.mrf.mxu1 }
 0x337   : > { %v4817_v13 = vadd.f32 %v3557_v57, %v1348_v7  ;;  %v1353_v16 = vmul.f32 0.35355338, %v3875_v12  ;;  %v1558_v42 = vadd.f32 %v3899_v1, %v3421_v32  ;;  %v2222_v60 = vsel %vm2188_vm2, %v4819_v22, -inf }
 0x338   : > { %v1332_v18 = vpop.f32.mrf.mxu0  ;;  %v1549_v19 = vpop.f32.mrf.mxu1 }
 0x339   : > { %v1351_v0 = vmul.f32 0.35355338, %v1332_v18  ;;  %v2216_v31 = vsel %vm2188_vm2, %v4817_v13, -inf  ;;  %v1550_v29 = vadd.f32 %v3421_v32, %v1549_v19  ;;  %v4835_v5 = vadd.f32 %v3568_v4, %v1353_v16 }
 0x33a   : > { %v3876_v17 = vpop.f32.mrf.mxu0  ;;  %2220 = vmax.xlane.f32.xlu0 %v2219_v30  ;;  %v3900_v11 = vpop.f32.mrf.mxu1  ;;  %2217 = vmax.xlane.f32.xlu1 %v2216_v31 }
 0x33b   : > { %v1561_v28 = vadd.f32 %v3900_v11, %v3421_v32  ;;  %v4828_v46 = vadd.f32 %v3564_v15, %v1351_v0  ;;  %v1354_v38 = vmul.f32 0.35355338, %v3876_v17  ;;  %v2231_v4 = vsel %vm2188_vm2, %v4835_v5, -inf }
 0x33c   : > { %v1335_v52 = vpop.f32.mrf.mxu0  ;;  %v1552_v57 = vpop.f32.mrf.mxu1  ;;  %v1545_v11 = vadd.f32 %v4801_v53, %v3421_v32 }
 0x33d   : > { %v1567_v7 = vpack.c.bf16 %v1561_v28, %v1558_v42  ;;  %v1352_v58 = vmul.f32 0.35355338, %v1335_v52  ;;  %v1553_v10 = vadd.f32 %v3421_v32, %v1552_v57  ;;  %v2225_v12 = vsel %vm2188_vm2, %v4828_v46, -inf }
 0x33e   : > { %v3907_v3 = vpop.f32.mrf.mxu0  ;;  %2226 = vmax.xlane.f32.xlu0 %v2225_v12  ;;  %2223 = vmax.xlane.f32.xlu1 %v2222_v60  ;;  %v4848_v31 = vadd.f32 %v3569_v40, %v1354_v38 }
 0x33f   : > { %v1566_v1 = vpack.c.bf16 %v1553_v10, %v1550_v29  ;;  %v1636_v15 = vadd.f32 %v3907_v3, %v3433_v59  ;;  %4093 = vmatprep.subr.msk.bf16.mxu1 %vm854_vm1, %v1567_v7  ;;  %v1684_v18 = vsel %vm854_vm1, %v1567_v7, 0  ;;  %v4841_v19 = vadd.f32 %v3565_v21, %v1352_v58 }
 0x340   : > { %v1627_v0 = vpop.f32.mrf.mxu0  ;;  %3914 = vmatpush3.bf16.xpose.msra.mxu1 %v1684_v18  ;;  %v1542_v21 = vadd.f32 %v4794_v41, %v3421_v32  ;;  %v2234_v57 = vsel %vm2188_vm2, %v4848_v31, -inf  ;;  %v1537_v41 = vadd.f32 %v3421_v32, %v4805_v62  ;;  %v1534_v18 = vadd.f32 %v3421_v32, %v4799_v50  ;;  %v4875_v50 = vld [vmem:[%s5381_s6 + $0x3] ss:$0 sm:$0xff] }
 0x341   : > { %v1628_v16 = vadd.f32 %v3433_v59, %v1627_v0  ;;  %4094 = vmatprep.subr.msk.bf16.mxu1 %vm854_vm1, %v1566_v1  ;;  %v2228_v30 = vsel %vm2188_vm2, %v4841_v19, -inf  ;;  %v1681_v38 = vsel %vm854_vm1, %v1566_v1, 0 }
 0x342   : > { %v3908_v17 = vpop.f32.mrf.mxu0  ;;  %2232 = vmax.xlane.f32.xlu0 %v2231_v4  ;;  %2229 = vmax.xlane.f32.xlu1 %v2228_v30  ;;  %v1565_v7 = vpack.c.bf16 %v1545_v11, %v1542_v21  ;;  %v1564_v30 = vpack.c.bf16 %v1537_v41, %v1534_v18 }
 0x343   : > { %v1639_v42 = vadd.f32 %v3908_v17, %v3433_v59 }
 0x344   : > { %v1630_v28 = vpop.f32.mrf.mxu0  ;;  %v1678_v17 = vsel %vm854_vm1, %v1565_v7, 0 }
 0x345   : > { %v4852_v29 = vpack.c.bf16 %v1639_v42, %v1636_v15  ;;  %v1631_v52 = vadd.f32 %v3433_v59, %v1630_v28  ;;  %v4135_v28 = vld [vmem:[%s5380_s5 + $0x38] sm:$0xff]  }
 0x346   : > { %v3911_v60 = vpop.f32.mrf.mxu0  ;;  %2235 = vmax.xlane.f32.xlu1 %v2234_v57  ;;  %v1675_v57 = vsel %vm854_vm1, %v1564_v30, 0 }
 0x347   : > { %v4856_v40 = vpack.c.bf16 %v1631_v52, %v1628_v16  ;;  %v1652_v12 = vadd.f32 %v3911_v60, %v3433_v59 }
 0x348   : > { %v1643_v58 = vpop.f32.mrf.mxu0  ;;  %3916 = vmatpush3.bf16.xpose.msra.mxu1 %v1681_v38  ;;  %v1459_v38 = vadd.f32 %v4778_v27, %v4789_v6 }
 0x349   : > { %v1644_v53 = vadd.f32 %v3433_v59, %v1643_v58  ;;  %4095 = vmatprep.subr.msk.bf16.mxu1 %vm854_vm1, %v1565_v7  ;;  %v1451_v7 = vadd.f32 %v4773_v14, %v4778_v27  ;;  %v4136_v14 = vld [vmem:[%s5380_s5 + $0x30] sm:$0xff]  }
 0x34a   : > { %v3912_v10 = vpop.f32.mrf.mxu0 }
 0x34b   : > { %v1655_v3 = vadd.f32 %v3912_v10, %v3433_v59  ;;  %v1456_v10 = vadd.f32 %v4778_v27, %v4784_v20  ;;  %v1464_v20 = vadd.f32 %v4782_v34, %v4778_v27 }
 0x34c   : > { %v1646_v15 = vpop.f32.mrf.mxu0 }
 0x34d   : > { %v4862_v0 = vpack.c.bf16 %v1655_v3, %v1652_v12  ;;  %v1647_v4 = vadd.f32 %v3433_v59, %v1646_v15  ;;  %v1472_v3 = vpack.c.bf16 %v1459_v38, %v1456_v10 }
 0x34e   : > { %v4864_v16 = vpop.f32.mrf.mxu0 }
 0x34f   : > { %v4866_v1 = vpack.c.bf16 %v1647_v4, %v1644_v53  ;;  %v1448_v53 = vadd.f32 %v4769_v25, %v4778_v27  ;;  %v1467_v25 = vadd.f32 %v4787_v36, %v4778_v27  ;;  %v3469_v36 = vld [vmem:[%s5382_s7 + $0x3] ss:$0 sm:$0xff] }
 0x350   : > { %3918 = vmatpush3.bf16.xpose.msra.mxu1 %v1678_v17  ;;  %v1843_v11 = vpop.f32.mrf.mxu0 }
 0x351   : > { %4096 = vmatprep.subr.msk.bf16.mxu1 %vm854_vm1, %v1564_v30  ;;  %v1844_v59 = vadd.f32 %v4875_v50, %v1843_v11  ;;  %v1471_v12 = vpack.c.bf16 %v1451_v7, %v1448_v53  ;;  %v1473_v30 = vpack.c.bf16 %v1467_v25, %v1464_v20 }
 0x352   : > { %v4870_v62 = vpop.f32.mrf.mxu0 }
 0x354   : > { %v1846_v32 = vpop.f32.mrf.mxu0 }
 0x355   : > { %v1847_v42 = vadd.f32 %v4875_v50, %v1846_v32 }
 0x356   : > { %v4882_v21 = vpop.f32.mrf.mxu0 }
 0x357   : > { %v1874_v52 = vpack.c.bf16 %v1847_v42, %v1844_v59 }
 0x358   : > { %3920 = vmatpush3.bf16.xpose.msra.mxu1 %v1675_v57  ;;  %v4885_v60 = vpop.f32.mrf.mxu0 }
 0x359   : > { %3973 = vmatprep.mubr.msk.bf16.mxu0 %vm854_vm1, %v1874_v52  ;;  %3953 = vmatprep.subr.bf16.mxu1 %v4135_v28 }
 0x35a   : > { %v4892_v58 = vpop.f32.mrf.mxu0 }
 0x35c   : > { %v1862_v41 = vpop.f32.mrf.mxu0 }
 0x35e   : > { %v3947_v15 = vpop.f32.mrf.mxu0 }
 0x35f   : > { %3922 = vmatmul.mubr.msk.bf16.vlgmr.msra.gmra.mxu1 %vm854_vm1, %v1471_v12  ;;  %v1863_v12 = vadd.f32 %v4875_v50, %v1862_v41  ;;  %v1868_v41 = vadd.f32 %v4882_v21, %v4875_v50 }
 0x360   : > { %3925 = vmatprep.mubr.msk.bf16.mxu1 %vm854_vm1, %v1472_v3  ;;  %v1937_v6 = vpop.f32.mrf.mxu0  ;;  %3954 = vmatpush3.bf16.msra.mxu1 %v4135_v28 }
 0x361   : > { %3955 = vmatprep.subr.bf16.mxu1 %v4136_v14 }
 0x362   : > { %v3948_v18 = vpop.f32.mrf.mxu0 }
 0x364   : > { %v1940_v4 = vpop.f32.mrf.mxu0  ;;  %3956 = vmatpush3.bf16.msra.mxu1 %v4136_v14  ;;  %v1860_v14 = vadd.f32 %v4875_v50, %v4885_v60 }
 0x365   : > { %3981 = vmatprep.subr.bf16.mxu1 %v4565_v39 }
 0x366   : > { %v3951_v17 = vpop.f32.mrf.mxu0 }
 0x367   : > { %3926 = vmatmul.mubr.msk.bf16.gmra.mxu1 %vm854_vm1, %v1473_v30  ;;  %v1962_v59 = vadd.f32 %v3951_v17, %v3469_v36  ;;  %v3611_v30 = vld [vmem:[%s5384_s9 + $0x50] sm:$0xff]  }
 0x368   : > { %v1953_v11 = vpop.f32.mrf.mxu0  ;;  %3957 = vmatprep.mubr.msk.bf16.mxu1 %vm426_vm0, %v4465_v43  ;;  %v1949_v43 = vadd.f32 %v3948_v18, %v3469_v36 }
 0x369   : > { %v1954_v34 = vadd.f32 %v3469_v36, %v1953_v11 }
 0x36a   : > { %v3952_v32 = vpop.f32.mrf.mxu0 }
 0x36b   : > { %v1965_v42 = vadd.f32 %v3952_v32, %v3469_v36 }
 0x36c   : > { %v1956_v27 = vpop.f32.mrf.mxu0 }
 0x36d   : > { %v1971_v28 = vpack.c.bf16 %v1965_v42, %v1962_v59  ;;  %v1957_v52 = vadd.f32 %v3469_v36, %v1956_v27  ;;  %v3612_v59 = vld [vmem:[%s5384_s9 + $0x58] sm:$0xff]  }
 0x36f   : > { %v1970_v57 = vpack.c.bf16 %v1957_v52, %v1954_v34  ;;  %3958 = vmatmul.mubr.msk.bf16.vlgmr.msra.gmra.mxu1 %vm426_vm0, %v4473_v51  ;;  %4097 = vmatprep.subr.msk.bf16.mxu0 %vm854_vm1, %v1971_v28  ;;  %v2088_v7 = vsel %vm854_vm1, %v1971_v28, 0  ;;  %v1946_v51 = vadd.f32 %v3947_v15, %v3469_v36  ;;  %v1876_v15 = vpack.c.bf16 %v1863_v12, %v1860_v14 }
 0x370   : > { %3982 = vmatpush3.bf16.msra.mxu1 %v4565_v39  ;;  %3961 = vmatprep.mubr.msk.bf16.mxu1 %vm426_vm0, %v4484_v48  ;;  %v1941_v48 = vadd.f32 %v3469_v36, %v1940_v4  ;;  %v3580_v34 = vunpack.c.l.bf16 %v3611_v30 }
 0x371   : > { %3966 = vmatpush3.bf16.xpose.msra.mxu0 %v2088_v7  ;;  %3983 = vmatprep.subr.bf16.mxu1 %v4569_v61  ;;  %v1969_v38 = vpack.c.bf16 %v1949_v43, %v1946_v51  ;;  %v2085_v39 = vsel %vm854_vm1, %v1970_v57, 0 }
 0x372   : > { %4098 = vmatprep.subr.msk.bf16.mxu0 %vm854_vm1, %v1970_v57  ;;  %v3584_v57 = vunpack.c.l.bf16 %v3612_v59 }
 0x373   : > { %v2082_v10 = vsel %vm854_vm1, %v1969_v38, 0 }
 0x374   : > { %3984 = vmatpush3.bf16.msra.mxu1 %v4569_v61  ;;  %v1938_v61 = vadd.f32 %v3469_v36, %v1937_v6 }
 0x375   : > { %3985 = vmatprep.subr.bf16.mxu1 %v4559_v44 }
 0x376   : > { %v1968_v53 = vpack.c.bf16 %v1941_v48, %v1938_v61  ;;  %v3581_v61 = vunpack.c.h.bf16 %v3611_v30 }
 0x377   : > { %3962 = vmatmul.mubr.msk.bf16.gmra.mxu1 %vm426_vm0, %v4493_v49 }
 0x378   : > { %3986 = vmatpush3.bf16.msra.mxu1 %v4559_v44  ;;  %v2079_v49 = vsel %vm854_vm1, %v1968_v53, 0  ;;  %v1855_v44 = vadd.f32 %v4870_v62, %v4875_v50  ;;  %v1871_v62 = vadd.f32 %v4892_v58, %v4875_v50 }
 0x379   : > { %3968 = vmatpush3.bf16.xpose.msra.mxu0 %v2085_v39  ;;  %3987 = vmatprep.subr.bf16.mxu1 %v4561_v47 }
 0x37a   : > { %4099 = vmatprep.subr.msk.bf16.mxu0 %vm854_vm1, %v1969_v38 }
 0x37c   : > { %3988 = vmatpush3.bf16.msra.mxu1 %v4561_v47  ;;  %v1852_v47 = vadd.f32 %v4864_v16, %v4875_v50  ;;  %v1877_v16 = vpack.c.bf16 %v1871_v62, %v1868_v41 }
 0x37e   : > { %v1875_v3 = vpack.c.bf16 %v1855_v44, %v1852_v47  ;;  %v3585_v44 = vunpack.c.h.bf16 %v3612_v59 }
 0x381   : > { %3970 = vmatpush3.bf16.xpose.msra.mxu0 %v2082_v10  ;;  %v4989_v10 = vld [vmem:[%s5383_s8 + $0x3] ss:$0 sm:$0xff] }
 0x382   : > { %4100 = vmatprep.subr.msk.bf16.mxu0 %vm854_vm1, %v1968_v53 }
 0x389   : > { %3972 = vmatpush3.bf16.xpose.msra.mxu0 %v2079_v49 }
 0x38a   : > { %4007 = vmatprep.subr.bf16.mxu0 %v4767_v24 }
 0x390   : > { %3974 = vmatmul.mubr.msk.bf16.vlgmr.msra.gmra.mxu0 %vm854_vm1, %v1875_v3 }
 0x391   : > { %3977 = vmatprep.mubr.msk.bf16.mxu0 %vm854_vm1, %v1876_v15  ;;  %4008 = vmatpush3.bf16.msra.mxu0 %v4767_v24  ;;  %v3609_v24 = vld [vmem:[%s5384_s9 + $0x40] sm:$0xff]  }
 0x392   : > { %4009 = vmatprep.subr.bf16.mxu0 %v4771_v23  ;;  %v3572_v21 = vunpack.c.l.bf16 %v3609_v24 }
 0x395   : > { %4010 = vmatpush3.bf16.msra.mxu0 %v4771_v23  ;;  %v3610_v23 = vld [vmem:[%s5384_s9 + $0x48] sm:$0xff]  }
 0x396   : > { %4011 = vmatprep.subr.bf16.mxu0 %v4761_v9  ;;  %v3577_v17 = vunpack.c.h.bf16 %v3610_v23 }
 0x398   : > { %3978 = vmatmul.mubr.msk.bf16.gmra.mxu0 %vm854_vm1, %v1877_v16 }
 0x399   : > { %4012 = vmatpush3.bf16.msra.mxu0 %v4761_v9  ;;  %v3576_v9 = vunpack.c.l.bf16 %v3610_v23 }
 0x39a   : > { %4013 = vmatprep.subr.bf16.mxu0 %v4765_v8 }
 0x39d   : > { %4014 = vmatpush3.bf16.msra.mxu0 %v4765_v8  ;;  %v3573_v8 = vunpack.c.h.bf16 %v3609_v24 }
 0x39e   : > { %4033 = vmatprep.subr.bf16.mxu0 %v4862_v0 }
 0x41f   : > { %v3923_v50 = vpop.f32.mrf.mxu1 }
 0x420   : > { %v1753_v58 = vmul.f32 0.35355338, %v3923_v50 }
 0x421   : > { %v1720_v60 = vpop.f32.mrf.mxu1 }
 0x422   : > { %v1751_v6 = vmul.f32 0.35355338, %v1720_v60  ;;  %v4971_v32 = vadd.f32 %v3576_v9, %v1753_v58 }
 0x423   : > { %v3924_v25 = vpop.f32.mrf.mxu1 }
 0x424   : > { %v4964_v18 = vadd.f32 %v3572_v21, %v1751_v6  ;;  %v1754_v20 = vmul.f32 0.35355338, %v3924_v25  ;;  %v2243_v51 = vsel %vm2188_vm2, %v4971_v32, -inf }
 0x425   : > { %v1723_v4 = vpop.f32.mrf.mxu1 }
 0x426   : > { %v1752_v11 = vmul.f32 0.35355338, %v1723_v4  ;;  %v2237_v36 = vsel %vm2188_vm2, %v4964_v18, -inf  ;;  %v4978_v52 = vadd.f32 %v3577_v17, %v1754_v20 }
 0x427   : > { %2238 = vmax.xlane.f32.xlu0 %v2237_v36  ;;  %v3927_v42 = vpop.f32.mrf.mxu1 }
 0x428   : > { %v4976_v27 = vadd.f32 %v3573_v8, %v1752_v11  ;;  %v1757_v7 = vmul.f32 0.35355338, %v3927_v42  ;;  %v2246_v49 = vsel %vm2188_vm2, %v4978_v52, -inf  ;;  %v2191_v42 = vpop.xlane.xlu0 %2190 }
 0x429   : > { %v1736_v28 = vpop.f32.mrf.mxu1 }
 0x42a   : > { %v1755_v43 = vmul.f32 0.35355338, %v1736_v28  ;;  %v2240_v38 = vsel %vm2188_vm2, %v4976_v27, -inf  ;;  %v4995_v3 = vadd.f32 %v3584_v57, %v1757_v7  ;;  %v2194_v28 = vpop.xlane.xlu1 %2193 }
 0x42b   : > { %2244 = vmax.xlane.f32.xlu0 %v2243_v51  ;;  %v3928_v39 = vpop.f32.mrf.mxu1  ;;  %2241 = vmax.xlane.f32.xlu1 %v2240_v38  ;;  %v2285_v51 = vsub.f32 %v4722_v26, %v2191_v42  ;;  %v3613_v38 = vld [vmem:[%s5384_s9 + $0x60] sm:$0xff]  }
 0x42c   : > { %v4984_v48 = vadd.f32 %v3580_v34, %v1755_v43  ;;  %v1758_v12 = vmul.f32 0.35355338, %v3928_v39  ;;  %v2255_v50 = vsel %vm2188_vm2, %v4995_v3, -inf  ;;  %v2197_v57 = vpop.xlane.xlu0 %2196 }
 0x42d   : > { %v1739_v53 = vpop.f32.mrf.mxu1  ;;  %v2287_v39 = vsub.f32 %v4729_v33, %v2197_v57 }
 0x42e   : > { %v1756_v47 = vmul.f32 0.35355338, %v1739_v53  ;;  %v2249_v14 = vsel %vm2188_vm2, %v4984_v48, -inf  ;;  %v5005_v21 = vadd.f32 %v3585_v44, %v1758_v12  ;;  %v2200_v7 = vpop.xlane.xlu1 %2199  ;;  %v3614_v44 = vld [vmem:[%s5384_s9 + $0x68] sm:$0xff]  }
 0x42f   : > { %2250 = vmax.xlane.f32.xlu0 %v2249_v14  ;;  %v3959_v15 = vpop.f32.mrf.mxu1  ;;  %2247 = vmax.xlane.f32.xlu1 %v2246_v49  ;;  %v2317_v14 = vmul.f32 1.442695, %v2285_v51 }
 0x430   : > { %v2040_v62 = vadd.f32 %v3959_v15, %v4989_v10  ;;  %v4998_v41 = vadd.f32 %v3581_v61, %v1756_v47  ;;  %v2258_v8 = vsel %vm2188_vm2, %v5005_v21, -inf  ;;  %v2203_v43 = vpop.xlane.xlu0 %2202  ;;  %v2286_v61 = vsub.f32 %v4734_v35, %v2194_v28  ;;  %v3616_v28 = vld [vmem:[%s5384_s9 + $0x78] sm:$0xff]  }
 0x431   : > { %v2031_v16 = vpop.f32.mrf.mxu1  ;;  %v3588_v47 = vunpack.c.l.bf16 %v3613_v38  ;;  %v2288_v15 = vsub.f32 %v4736_v37, %v2200_v7  ;;  %v2289_v33 = vsub.f32 %v4742_v45, %v2203_v43  ;;  %4153 = vpow2.f32 %v2317_v14  ;;  %v3615_v37 = vld [vmem:[%s5384_s9 + $0x70] sm:$0xff]  }
 0x432   : > { %v2032_v24 = vadd.f32 %v4989_v10, %v2031_v16  ;;  %v2252_v23 = vsel %vm2188_vm2, %v4998_v41, -inf  ;;  %v2206_v53 = vpop.xlane.xlu1 %2205 }
 0x433   : > { %2256 = vmax.xlane.f32.xlu0 %v2255_v50  ;;  %v3960_v60 = vpop.f32.mrf.mxu1  ;;  %2253 = vmax.xlane.f32.xlu1 %v2252_v23  ;;  %v3592_v50 = vunpack.c.l.bf16 %v3614_v44  ;;  %v2319_v23 = vmul.f32 1.442695, %v2286_v61  ;;  %v2325_v57 = vmul.f32 1.442695, %v2289_v33  ;;  %v2290_v51 = vsub.f32 %v4750_v56, %v2206_v53 }
 0x434   : > { %v2043_v58 = vadd.f32 %v3960_v60, %v4989_v10  ;;  %v2209_v12 = vpop.xlane.xlu0 %2208 }
 0x435   : > { %v2034_v6 = vpop.f32.mrf.mxu1  ;;  %v2291_v43 = vsub.f32 %v4748_v54, %v2209_v12  ;;  %v2327_v12 = vmul.f32 1.442695, %v2290_v51 }
 0x436   : > { %v5008_v9 = vpack.c.bf16 %v2043_v58, %v2040_v62  ;;  %v2035_v25 = vadd.f32 %v4989_v10, %v2034_v6  ;;  %v2321_v62 = vmul.f32 1.442695, %v2287_v39  ;;  %v3589_v6 = vunpack.c.h.bf16 %v3613_v38 }
 0x437   : > { %v5013_v20 = vpop.f32.mrf.mxu1  ;;  %2259 = vmax.xlane.f32.xlu1 %v2258_v8  ;;  %v2212_v8 = vpop.xlane.xlu1 %2211  ;;  %v3596_v39 = vunpack.c.l.bf16 %v3615_v37  ;;  %v2329_v53 = vmul.f32 1.442695, %v2291_v43 }
 0x438   : > { %v5015_v4 = vpack.c.bf16 %v2035_v25, %v2032_v24  ;;  %v2215_v60 = vpop.xlane.xlu0 %2214  ;;  %v2323_v25 = vmul.f32 1.442695, %v2288_v15  ;;  %4155 = vpow2.f32 %v2321_v62 }
 0x439   : > { %v2047_v30 = vpop.f32.mrf.mxu1  ;;  %4157 = vpow2.f32 %v2319_v23  ;;  %v2293_v23 = vsub.f32 %v4803_v55, %v2215_v60 }
 0x43a   : > { %v2048_v17 = vadd.f32 %v4989_v10, %v2047_v30  ;;  %4159 = vpow2.f32 %v2323_v25 }
 0x43b   : > { %v5018_v11 = vpop.f32.mrf.mxu1  ;;  %v2218_v61 = vpop.xlane.xlu1 %2217  ;;  %4161 = vpow2.f32 %v2325_v57  ;;  %v2333_v60 = vmul.f32 1.442695, %v2293_v23 }
 0x43c   : > { %v2221_v14 = vpop.xlane.xlu0 %2220  ;;  %4163 = vpow2.f32 %v2329_v53 }
 0x43d   : > { %v2050_v36 = vpop.f32.mrf.mxu1  ;;  %4165 = vpow2.f32 %v2327_v12 }
 0x43e   : > { %v2051_v59 = vadd.f32 %v4989_v10, %v2050_v36  ;;  %v3593_v36 = vunpack.c.h.bf16 %v3614_v44 }
 0x440   : > { %v5021_v34 = vpack.c.bf16 %v2051_v59, %v2048_v17 }
 0x450   : > { %v3975_v49 = vpop.f32.mrf.mxu0 }
 0x451   : > { %v2157_v16 = vmul.f32 0.35355338, %v3975_v49 }
 0x452   : > { %v2124_v26 = vpop.f32.mrf.mxu0 }
 0x453   : > { %v2155_v24 = vmul.f32 0.35355338, %v2124_v26  ;;  %v5041_v42 = vadd.f32 %v3592_v50, %v2157_v16  ;;  %v2292_v50 = vsub.f32 %v4759_v2, %v2212_v8  ;;  %v2295_v8 = vsub.f32 %v4812_v63, %v2221_v14 }
 0x454   : > { %v3976_v35 = vpop.f32.mrf.mxu0 }
 0x455   : > { %v5034_v58 = vadd.f32 %v3588_v47, %v2155_v24  ;;  %v2158_v30 = vmul.f32 0.35355338, %v3976_v35  ;;  %v3600_v47 = vunpack.c.l.bf16 %v3616_v28  ;;  %v2267_v62 = vsel %vm2188_vm2, %v5041_v42, -inf }
 0x456   : > { %v2127_v17 = vpop.f32.mrf.mxu0  ;;  %v3597_v24 = vunpack.c.h.bf16 %v3615_v37  ;;  %v2227_v37 = vpop.xlane.xlu0 %2226  ;;  %v2331_v55 = vmul.f32 1.442695, %v2292_v50  ;;  %v2337_v63 = vmul.f32 1.442695, %v2295_v8 }
 0x457   : > { %v2156_v59 = vmul.f32 0.35355338, %v2127_v17  ;;  %v2261_v45 = vsel %vm2188_vm2, %v5034_v58, -inf  ;;  %v5050_v44 = vadd.f32 %v3593_v36, %v2158_v30 }
 0x458   : > { %v3979_v7 = vpop.f32.mrf.mxu0  ;;  %2262 = vmax.xlane.f32.xlu0 %v2261_v45  ;;  %v5069_v45 = vpop.eup %4153  ;;  %4167 = vpow2.f32 %v2331_v55 }
 0x459   : > { %v5048_v38 = vadd.f32 %v3589_v6, %v2156_v59  ;;  %v2161_v15 = vmul.f32 0.35355338, %v3979_v7  ;;  %v2270_v35 = vsel %vm2188_vm2, %v5050_v44, -inf  ;;  %v3601_v6 = vunpack.c.h.bf16 %v3616_v28  ;;  %v2224_v59 = vpop.xlane.xlu1 %2223  ;;  %v5078_v51 = vpop.eup %4155 }
 0x45a   : > { %v2140_v49 = vpop.f32.mrf.mxu0  ;;  %v2294_v28 = vsub.f32 %v4817_v13, %v2218_v61  ;;  %v2381_v13 = vsel %vm2188_vm2, %v5069_v45, 0.0  ;;  %4169 = vpow2.f32 %v2333_v60  ;;  %v2387_v53 = vsel %vm2188_vm2, %v5078_v51, 0.0 }
 0x45b   : > { %v2159_v26 = vmul.f32 0.35355338, %v2140_v49  ;;  %v2264_v54 = vsel %vm2188_vm2, %v5048_v38, -inf  ;;  %v5064_v36 = vadd.f32 %v3600_v47, %v2161_v15  ;;  %v2297_v49 = vsub.f32 %v4828_v46, %v2227_v37 }
 0x45c   : > { %v3980_v56 = vpop.f32.mrf.mxu0  ;;  %2268 = vmax.xlane.f32.xlu0 %v2267_v62  ;;  %2265 = vmax.xlane.f32.xlu1 %v2264_v54  ;;  %v2335_v14 = vmul.f32 1.442695, %v2294_v28  ;;  %v2296_v15 = vsub.f32 %v4819_v22, %v2224_v59  ;;  %4171 = vpow2.f32 %v2337_v63 }
 0x45d   : > { %v5056_v16 = vadd.f32 %v3596_v39, %v2159_v26  ;;  %v2162_v25 = vmul.f32 0.35355338, %v3980_v56  ;;  %v2279_v57 = vsel %vm2188_vm2, %v5064_v36, -inf  ;;  %v5080_v39 = vpop.eup %4157  ;;  %v2230_v47 = vpop.xlane.xlu1 %2229  ;;  %v2341_v46 = vmul.f32 1.442695, %v2297_v49 }
 0x45e   : > { %v2143_v33 = vpop.f32.mrf.mxu0  ;;  %v5085_v61 = vpop.eup %4159  ;;  %4173 = vpow2.f32 %v2335_v14  ;;  %v2339_v12 = vmul.f32 1.442695, %v2296_v15  ;;  %v2384_v22 = vsel %vm2188_vm2, %v5080_v39, 0.0 }
 0x45f   : > { %v2160_v30 = vmul.f32 0.35355338, %v2143_v33  ;;  %v2273_v17 = vsel %vm2188_vm2, %v5056_v16, -inf  ;;  %v5076_v43 = vadd.f32 %v3601_v6, %v2162_v25  ;;  %v2233_v26 = vpop.xlane.xlu0 %2232  ;;  %v5090_v54 = vpop.eup %4161  ;;  %4175 = vpow2.f32 %v2341_v46 }
 0x460   : > { %2274 = vmax.xlane.f32.xlu0 %v2273_v17  ;;  %2271 = vmax.xlane.f32.xlu1 %v2270_v35  ;;  %v2299_v56 = vsub.f32 %v4835_v5, %v2233_v26  ;;  %v5098_v23 = vpop.eup %4163  ;;  %v2390_v5 = vsel %vm2188_vm2, %v5085_v61, 0.0  ;;  %4177 = vpow2.f32 %v2339_v12 }
 0x461   : > { %v5066_v2 = vadd.f32 %v3597_v24, %v2160_v30  ;;  %v2282_v62 = vsel %vm2188_vm2, %v5076_v43, -inf  ;;  %v2298_v24 = vsub.f32 %v4841_v19, %v2230_v47  ;;  %v2236_v50 = vpop.xlane.xlu1 %2235  ;;  %v5102_v35 = vpop.eup %4165  ;;  %v2393_v19 = vsel %vm2188_vm2, %v5090_v54, 0.0 }
 0x462   : > { %v2345_v33 = vmul.f32 1.442695, %v2299_v56  ;;  %v2300_v25 = vsub.f32 %v4848_v31, %v2236_v50  ;;  %v2399_v59 = vsel %vm2188_vm2, %v5098_v23, 0.0  ;;  %v2396_v37 = vsel %vm2188_vm2, %v5102_v35, 0.0 }
 0x463   : > { %v2276_v7 = vsel %vm2188_vm2, %v5066_v2, -inf  ;;  %v2343_v6 = vmul.f32 1.442695, %v2298_v24 }
 0x464   : > { %2280 = vmax.xlane.f32.xlu0 %v2279_v57  ;;  %2277 = vmax.xlane.f32.xlu1 %v2276_v7  ;;  %4179 = vpow2.f32 %v2345_v33  ;;  %v2347_v17 = vmul.f32 1.442695, %v2300_v25 }
 0x465   : > { %v5107_v30 = vpop.eup %4167  ;;  %4181 = vpow2.f32 %v2343_v6 }
 0x466   : > { %4183 = vpow2.f32 %v2347_v17  ;;  %v2402_v8 = vsel %vm2188_vm2, %v5107_v30, 0.0 }
 0x467   : > { %v5113_v55 = vpop.eup %4169 }
 0x468   : > { %2382 = vadd.xlane.f32.xlu0 %v2381_v13  ;;  %2283 = vmax.xlane.f32.xlu1 %v2282_v62  ;;  %v2405_v60 = vsel %vm2188_vm2, %v5113_v55, 0.0 }
 0x469   : > { %v5115_v31 = vpop.eup %4171 }
 0x46a   : > { %v2411_v7 = vsel %vm2188_vm2, %v5115_v31, 0.0 }
 0x46b   : > { %v5121_v28 = vpop.eup %4173 }
 0x46c   : > { %2388 = vadd.xlane.f32.xlu0 %v2387_v53  ;;  %2385 = vadd.xlane.f32.xlu1 %v2384_v22  ;;  %v5123_v57 = vpop.eup %4175  ;;  %v2408_v63 = vsel %vm2188_vm2, %v5121_v28, 0.0 }
 0x46d   : > { %v5129_v49 = vpop.eup %4177  ;;  %v2417_v13 = vsel %vm2188_vm2, %v5123_v57, 0.0 }
 0x46e   : > { %v2414_v14 = vsel %vm2188_vm2, %v5129_v49, 0.0 }
 0x470   : > { %2394 = vadd.xlane.f32.xlu0 %v2393_v19  ;;  %2391 = vadd.xlane.f32.xlu1 %v2390_v5 }
 0x471   : > { %v5131_v47 = vpop.eup %4179 }
 0x472   : > { %v5137_v15 = vpop.eup %4181  ;;  %v2423_v26 = vsel %vm2188_vm2, %v5131_v47, 0.0 }
 0x473   : > { %v2420_v62 = vsel %vm2188_vm2, %v5137_v15, 0.0  ;;  %v5143_v46 = vpop.eup %4183 }
 0x474   : > { %2400 = vadd.xlane.f32.xlu0 %v2399_v59  ;;  %2397 = vadd.xlane.f32.xlu1 %v2396_v37  ;;  %v2426_v56 = vsel %vm2188_vm2, %v5143_v46, 0.0 }
 0x478   : > { %2406 = vadd.xlane.f32.xlu0 %v2405_v60  ;;  %2403 = vadd.xlane.f32.xlu1 %v2402_v8 }
 0x47c   : > { %2412 = vadd.xlane.f32.xlu0 %v2411_v7  ;;  %2409 = vadd.xlane.f32.xlu1 %v2408_v63 }
 0x480   : > { %2418 = vadd.xlane.f32.xlu0 %v2417_v13  ;;  %2415 = vadd.xlane.f32.xlu1 %v2414_v14 }
 0x484   : > { %2424 = vadd.xlane.f32.xlu0 %v2423_v26  ;;  %2421 = vadd.xlane.f32.xlu1 %v2420_v62 }
 0x488   : > { %2427 = vadd.xlane.f32.xlu1 %v2426_v56 }
 0x4b0   : > { %v2239_v53 = vpop.xlane.xlu0 %2238 }
 0x4b1   : > { %v2301_v12 = vsub.f32 %v4964_v18, %v2239_v53 }
 0x4b3   : > { %v2349_v24 = vmul.f32 1.442695, %v2301_v12 }
 0x4b4   : > { %v2245_v22 = vpop.xlane.xlu0 %2244  ;;  %v2242_v50 = vpop.xlane.xlu1 %2241 }
 0x4b5   : > { %4185 = vpow2.f32 %v2349_v24  ;;  %v2303_v33 = vsub.f32 %v4971_v32, %v2245_v22  ;;  %v2302_v5 = vsub.f32 %v4976_v27, %v2242_v50 }
 0x4b7   : > { %v2353_v6 = vmul.f32 1.442695, %v2303_v33  ;;  %v2351_v25 = vmul.f32 1.442695, %v2302_v5 }
 0x4b8   : > { %v2251_v19 = vpop.xlane.xlu0 %2250  ;;  %v2248_v17 = vpop.xlane.xlu1 %2247 }
 0x4b9   : > { %4187 = vpow2.f32 %v2353_v6  ;;  %v2305_v59 = vsub.f32 %v4984_v48, %v2251_v19  ;;  %v2304_v37 = vsub.f32 %v4978_v52, %v2248_v17 }
 0x4ba   : > { %4189 = vpow2.f32 %v2351_v25 }
 0x4bb   : > { %v2357_v60 = vmul.f32 1.442695, %v2305_v59  ;;  %v2355_v18 = vmul.f32 1.442695, %v2304_v37 }
 0x4bc   : > { %v2257_v8 = vpop.xlane.xlu0 %2256  ;;  %v2254_v7 = vpop.xlane.xlu1 %2253 }
 0x4bd   : > { %4191 = vpow2.f32 %v2357_v60  ;;  %v2307_v63 = vsub.f32 %v4995_v3, %v2257_v8  ;;  %v2306_v32 = vsub.f32 %v4998_v41, %v2254_v7 }
 0x4be   : > { %4193 = vpow2.f32 %v2355_v18 }
 0x4bf   : > { %v2361_v27 = vmul.f32 1.442695, %v2307_v63  ;;  %v2359_v13 = vmul.f32 1.442695, %v2306_v32 }
 0x4c0   : > { %v2260_v14 = vpop.xlane.xlu1 %2259 }
 0x4c1   : > { %4195 = vpow2.f32 %v2361_v27  ;;  %v2308_v26 = vsub.f32 %v5005_v21, %v2260_v14 }
 0x4c2   : > { %v5155_v48 = vpop.eup %4185  ;;  %4197 = vpow2.f32 %v2359_v13 }
 0x4c3   : > { %v2363_v52 = vmul.f32 1.442695, %v2308_v26  ;;  %v2429_v62 = vsel %vm2188_vm2, %v5155_v48, 0.0 }
 0x4c4   : > { %2430 = vadd.xlane.f32.xlu0 %v2429_v62 }
 0x4c5   : > { %4199 = vpow2.f32 %v2363_v52 }
 0x4c6   : > { %v5159_v56 = vpop.eup %4187 }
 0x4c7   : > { %v5161_v3 = vpop.eup %4189  ;;  %v2435_v41 = vsel %vm2188_vm2, %v5159_v56, 0.0 }
 0x4c8   : > { %2436 = vadd.xlane.f32.xlu0 %v2435_v41  ;;  %v2432_v21 = vsel %vm2188_vm2, %v5161_v3, 0.0 }
 0x4c9   : > { %2433 = vadd.xlane.f32.xlu1 %v2432_v21 }
 0x4ca   : > { %v5167_v53 = vpop.eup %4191 }
 0x4cb   : > { %v5169_v12 = vpop.eup %4193  ;;  %v2441_v24 = vsel %vm2188_vm2, %v5167_v53, 0.0 }
 0x4cc   : > { %2442 = vadd.xlane.f32.xlu0 %v2441_v24  ;;  %v2438_v22 = vsel %vm2188_vm2, %v5169_v12, 0.0 }
 0x4cd   : > { %2439 = vadd.xlane.f32.xlu1 %v2438_v22 }
 0x4ce   : > { %v5175_v50 = vpop.eup %4195 }
 0x4cf   : > { %v5177_v33 = vpop.eup %4197  ;;  %v2447_v5 = vsel %vm2188_vm2, %v5175_v50, 0.0 }
 0x4d0   : > { %2448 = vadd.xlane.f32.xlu0 %v2447_v5  ;;  %v2444_v6 = vsel %vm2188_vm2, %v5177_v33, 0.0 }
 0x4d1   : > { %2445 = vadd.xlane.f32.xlu1 %v2444_v6 }
 0x4d2   : > { %v5183_v25 = vpop.eup %4199 }
 0x4d3   : > { %v2450_v19 = vsel %vm2188_vm2, %v5183_v25, 0.0 }
 0x4d5   : > { %2451 = vadd.xlane.f32.xlu1 %v2450_v19 }
 0x4e1   : > { %v2263_v17 = vpop.xlane.xlu0 %2262 }
 0x4e2   : > { %v2309_v59 = vsub.f32 %v5034_v58, %v2263_v17 }
 0x4e4   : > { %v2365_v37 = vmul.f32 1.442695, %v2309_v59 }
 0x4e5   : > { %v2269_v60 = vpop.xlane.xlu0 %2268  ;;  %v2266_v18 = vpop.xlane.xlu1 %2265 }
 0x4e6   : > { %4201 = vpow2.f32 %v2365_v37  ;;  %v2311_v8 = vsub.f32 %v5041_v42, %v2269_v60  ;;  %v2310_v7 = vsub.f32 %v5048_v38, %v2266_v18 }
 0x4e8   : > { %v2369_v63 = vmul.f32 1.442695, %v2311_v8  ;;  %v2367_v32 = vmul.f32 1.442695, %v2310_v7 }
 0x4e9   : > { %v2275_v27 = vpop.xlane.xlu0 %2274  ;;  %v2272_v13 = vpop.xlane.xlu1 %2271 }
 0x4ea   : > { %4203 = vpow2.f32 %v2369_v63  ;;  %v2313_v14 = vsub.f32 %v5056_v16, %v2275_v27  ;;  %v2312_v26 = vsub.f32 %v5050_v44, %v2272_v13 }
 0x4eb   : > { %4205 = vpow2.f32 %v2367_v32 }
 0x4ec   : > { %v2373_v52 = vmul.f32 1.442695, %v2313_v14  ;;  %v2371_v58 = vmul.f32 1.442695, %v2312_v26 }
 0x4ed   : > { %v2281_v62 = vpop.xlane.xlu0 %2280  ;;  %v2278_v41 = vpop.xlane.xlu1 %2277 }
 0x4ee   : > { %4207 = vpow2.f32 %v2373_v52  ;;  %v2315_v21 = vsub.f32 %v5064_v36, %v2281_v62  ;;  %v2314_v42 = vsub.f32 %v5066_v2, %v2278_v41 }
 0x4ef   : > { %4209 = vpow2.f32 %v2371_v58 }
 0x4f0   : > { %v2377_v38 = vmul.f32 1.442695, %v2315_v21  ;;  %v2375_v24 = vmul.f32 1.442695, %v2314_v42 }
 0x4f1   : > { %v2383_v22 = vpop.xlane.xlu0 %2382  ;;  %v2284_v5 = vpop.xlane.xlu1 %2283 }
 0x4f2   : > { %4211 = vpow2.f32 %v2377_v38  ;;  %v2316_v16 = vsub.f32 %v5076_v43, %v2284_v5 }
 0x4f3   : > { %v5195_v6 = vpop.eup %4201  ;;  %4213 = vpow2.f32 %v2375_v24 }
 0x4f4   : > { %v2379_v44 = vmul.f32 1.442695, %v2316_v16  ;;  %v2453_v19 = vsel %vm2188_vm2, %v5195_v6, 0.0  ;;  %4215 = vrcp.f32 %v2383_v22 }
 0x4f5   : > { %2454 = vadd.xlane.f32.xlu0 %v2453_v19  ;;  %v2389_v36 = vpop.xlane.xlu0 %2388  ;;  %v2386_v17 = vpop.xlane.xlu1 %2385 }
 0x4f6   : > { %4217 = vpow2.f32 %v2379_v44 }
 0x4f7   : > { %v5199_v2 = vpop.eup %4203  ;;  %4219 = vrcp.f32 %v2386_v17 }
 0x4f8   : > { %v5201_v59 = vpop.eup %4205  ;;  %v2459_v43 = vsel %vm2188_vm2, %v5199_v2, 0.0  ;;  %4221 = vrcp.f32 %v2389_v36 }
 0x4f9   : > { %2460 = vadd.xlane.f32.xlu0 %v2459_v43  ;;  %v2395_v37 = vpop.xlane.xlu0 %2394  ;;  %v2456_v60 = vsel %vm2188_vm2, %v5201_v59, 0.0  ;;  %v2392_v18 = vpop.xlane.xlu1 %2391 }
 0x4fa   : > { %2457 = vadd.xlane.f32.xlu1 %v2456_v60  ;;  %4223 = vrcp.f32 %v2392_v18 }
 0x4fb   : > { %v5207_v8 = vpop.eup %4207  ;;  %4225 = vrcp.f32 %v2395_v37 }
 0x4fc   : > { %v5209_v7 = vpop.eup %4209  ;;  %v2465_v63 = vsel %vm2188_vm2, %v5207_v8, 0.0 }
 0x4fd   : > { %2466 = vadd.xlane.f32.xlu0 %v2465_v63  ;;  %v2401_v32 = vpop.xlane.xlu0 %2400  ;;  %v2462_v27 = vsel %vm2188_vm2, %v5209_v7, 0.0  ;;  %v2398_v13 = vpop.xlane.xlu1 %2397 }
 0x4fe   : > { %2463 = vadd.xlane.f32.xlu1 %v2462_v27  ;;  %4227 = vrcp.f32 %v2398_v13 }
 0x4ff   : > { %v5215_v14 = vpop.eup %4211  ;;  %4229 = vrcp.f32 %v2401_v32 }
 0x500   : > { %v5217_v26 = vpop.eup %4213  ;;  %v2471_v52 = vsel %vm2188_vm2, %v5215_v14, 0.0 }
 0x501   : > { %2472 = vadd.xlane.f32.xlu0 %v2471_v52  ;;  %v2407_v58 = vpop.xlane.xlu0 %2406  ;;  %v2468_v62 = vsel %vm2188_vm2, %v5217_v26, 0.0  ;;  %v2404_v41 = vpop.xlane.xlu1 %2403 }
 0x502   : > { %v4216_v21 = vpop.eup %4215  ;;  %2469 = vadd.xlane.f32.xlu1 %v2468_v62  ;;  %4231 = vrcp.f32 %v2404_v41 }
 0x503   : > { %v5223_v42 = vpop.eup %4217  ;;  %4233 = vrcp.f32 %v2407_v58  ;;  %v2509_v44 = vmul.f32 %v4216_v21, %v5069_v45 }
 0x504   : > { %v2474_v38 = vsel %vm2188_vm2, %v5223_v42, 0.0  ;;  %v4220_v24 = vpop.eup %4219 }
 0x505   : > { %v2413_v22 = vpop.xlane.xlu0 %2412  ;;  %v2410_v5 = vpop.xlane.xlu1 %2409  ;;  %v2510_v19 = vmul.f32 %v4220_v24, %v5080_v39 }
 0x506   : > { %v4222_v16 = vpop.eup %4221  ;;  %2475 = vadd.xlane.f32.xlu1 %v2474_v38  ;;  %4235 = vrcp.f32 %v2410_v5 }
 0x507   : > { %v4224_v36 = vpop.eup %4223  ;;  %v2541_v17 = vpack.c.bf16 %v2510_v19, %v2509_v44  ;;  %v2511_v43 = vmul.f32 %v4222_v16, %v5078_v51  ;;  %4237 = vrcp.f32 %v2413_v22 }
 0x508   : > { %v2512_v37 = vmul.f32 %v4224_v36, %v5085_v61  ;;  %v4226_v63 = vpop.eup %4225 }
 0x509   : > { %v2419_v60 = vpop.xlane.xlu0 %2418  ;;  %v2416_v18 = vpop.xlane.xlu1 %2415  ;;  %3989 = vmatprep.mubr.msk.bf16.mxu1 %vm2188_vm2, %v2541_v17  ;;  %v2513_v13 = vmul.f32 %v4226_v63, %v5090_v54 }
 0x50a   : > { %v2542_v32 = vpack.c.bf16 %v2512_v37, %v2511_v43  ;;  %4239 = vrcp.f32 %v2416_v18 }
 0x50b   : > { %v4228_v27 = vpop.eup %4227  ;;  %4241 = vrcp.f32 %v2419_v60 }
 0x50c   : > { %3990 = vmatmul.mubr.msk.bf16.vlgmr.msra.gmra.mxu1 %vm2188_vm2, %v2542_v32  ;;  %v2514_v51 = vmul.f32 %v4228_v27, %v5102_v35  ;;  %v4230_v52 = vpop.eup %4229 }
 0x50d   : > { %v2425_v45 = vpop.xlane.xlu0 %2424  ;;  %v2422_v39 = vpop.xlane.xlu1 %2421  ;;  %v2515_v41 = vmul.f32 %v4230_v52, %v5098_v23 }
 0x50e   : > { %4243 = vrcp.f32 %v2422_v39  ;;  %v2543_v61 = vpack.c.bf16 %v2514_v51, %v2513_v13 }
 0x50f   : > { %v4232_v58 = vpop.eup %4231  ;;  %4245 = vrcp.f32 %v2425_v45 }
 0x510   : > { %3993 = vmatprep.mubr.msk.bf16.mxu1 %vm2188_vm2, %v2543_v61  ;;  %v2516_v21 = vmul.f32 %v4232_v58, %v5107_v30  ;;  %v4234_v38 = vpop.eup %4233  ;;  %v5272_v61 = vld [vmem:[%s5385_s10 + $0x4] sm:$0xf] }
 0x511   : > { %v2428_v62 = vpop.xlane.xlu1 %2427  ;;  %v2517_v54 = vmul.f32 %v4234_v38, %v5113_v55 }
 0x512   : > { %4247 = vrcp.f32 %v2428_v62  ;;  %v2544_v24 = vpack.c.bf16 %v2516_v21, %v2515_v41 }
 0x513   : > { %v4236_v22 = vpop.eup %4235 }
 0x514   : > { %3994 = vmatmul.mubr.msk.bf16.gmra.mxu1 %vm2188_vm2, %v2544_v24  ;;  %v2518_v35 = vmul.f32 %v4236_v22, %v5121_v28  ;;  %v4238_v5 = vpop.eup %4237 }
 0x515   : > { %v2519_v19 = vmul.f32 %v4238_v5, %v5115_v31 }
 0x516   : > { %v2545_v16 = vpack.c.bf16 %v2518_v35, %v2517_v54 }
 0x517   : > { %v4240_v44 = vpop.eup %4239 }
 0x518   : > { %v2520_v36 = vmul.f32 %v4240_v44, %v5129_v49  ;;  %4015 = vmatprep.mubr.msk.bf16.mxu0 %vm2188_vm2, %v2545_v16  ;;  %v4242_v23 = vpop.eup %4241 }
 0x519   : > { %v2521_v37 = vmul.f32 %v4242_v23, %v5123_v57  ;;  %v2059_v57 = vadd.f32 %v5018_v11, %v4989_v10  ;;  %v2653_v11 = vld [vmem:[%s5385_s10] sm:$0xf] }
 0x51a   : > { %v2546_v30 = vpack.c.bf16 %v2520_v36, %v2519_v19  ;;  %4101 = vmatprep.subr.msk.bf16.mxu1 %vm2666_vm3, %v2653_v11 }
 0x51b   : > { %v4244_v17 = vpop.eup %4243 }
 0x51c   : > { %v4246_v43 = vpop.eup %4245  ;;  %4016 = vmatmul.mubr.msk.bf16.vlgmr.msra.gmra.mxu0 %vm2188_vm2, %v2546_v30  ;;  %v2522_v55 = vmul.f32 %v4244_v17, %v5137_v15 }
 0x51d   : > { %4034 = vmatpush3.bf16.msra.mxu0 %v4862_v0  ;;  %v2523_v49 = vmul.f32 %v4246_v43, %v5131_v47  ;;  %v2056_v0 = vadd.f32 %v5013_v20, %v4989_v10 }
 0x51e   : > { %4035 = vmatprep.subr.bf16.mxu0 %v4866_v1  ;;  %v2547_v31 = vpack.c.bf16 %v2522_v55, %v2521_v37 }
 0x51f   : > { %v4248_v28 = vpop.eup %4247  ;;  %v2065_v47 = vpack.c.bf16 %v2059_v57, %v2056_v0 }
 0x520   : > { %v2524_v60 = vmul.f32 %v4248_v28, %v5143_v46  ;;  %4019 = vmatprep.mubr.msk.bf16.mxu0 %vm2188_vm2, %v2547_v31 }
 0x521   : > { %4036 = vmatpush3.bf16.msra.mxu0 %v4866_v1 }
 0x522   : > { %v2548_v18 = vpack.c.bf16 %v2524_v60, %v2523_v49  ;;  %4037 = vmatprep.subr.bf16.mxu0 %v4852_v29 }
 0x524   : > { %4020 = vmatmul.mubr.msk.bf16.gmra.mxu0 %vm2188_vm2, %v2548_v18 }
 0x525   : > { %4038 = vmatpush3.bf16.msra.mxu0 %v4852_v29  ;;  %v2668_v29 = vsel %vm2666_vm3, %v2653_v11, 0 }
 0x526   : > { %4039 = vmatprep.subr.bf16.mxu0 %v4856_v40  ;;  %3998 = vmatpush3.bf16.msra.mxu1 %v2668_v29 }
 0x527   : > { %4102 = vmatprep.subr.msk.bf16.mxu1 %vm2666_vm3, %v5272_v61 }
 0x529   : > { %4040 = vmatpush3.bf16.msra.mxu0 %v4856_v40 }
 0x52a   : > { %4059 = vmatprep.subr.bf16.mxu0 %v2065_v47 }
 0x54d   : > { %v2431_v1 = vpop.xlane.xlu0 %2430 }
 0x54e   : > { %4249 = vrcp.f32 %v2431_v1 }
 0x551   : > { %v2437_v15 = vpop.xlane.xlu0 %2436 }
 0x552   : > { %v2434_v46 = vpop.xlane.xlu1 %2433 }
 0x553   : > { %4251 = vrcp.f32 %v2434_v46 }
 0x554   : > { %4253 = vrcp.f32 %v2437_v15 }
 0x555   : > { %v2443_v10 = vpop.xlane.xlu0 %2442 }
 0x556   : > { %v2440_v20 = vpop.xlane.xlu1 %2439 }
 0x557   : > { %4255 = vrcp.f32 %v2440_v20 }
 0x558   : > { %4257 = vrcp.f32 %v2443_v10 }
 0x559   : > { %v2449_v40 = vpop.xlane.xlu0 %2448 }
 0x55a   : > { %v2446_v63 = vpop.xlane.xlu1 %2445 }
 0x55b   : > { %4259 = vrcp.f32 %v2446_v63  ;;  %v4250_v32 = vpop.eup %4249 }
 0x55c   : > { %4261 = vrcp.f32 %v2449_v40  ;;  %v2525_v39 = vmul.f32 %v4250_v32, %v5155_v48 }
 0x55e   : > { %v2452_v27 = vpop.xlane.xlu1 %2451 }
 0x55f   : > { %4263 = vrcp.f32 %v2452_v27 }
 0x560   : > { %v4252_v45 = vpop.eup %4251 }
 0x561   : > { %v2526_v13 = vmul.f32 %v4252_v45, %v5161_v3  ;;  %v4254_v51 = vpop.eup %4253 }
 0x562   : > { %v2527_v62 = vmul.f32 %v4254_v51, %v5159_v56 }
 0x563   : > { %v2549_v52 = vpack.c.bf16 %v2526_v13, %v2525_v39 }
 0x564   : > { %v4256_v58 = vpop.eup %4255 }
 0x565   : > { %v2528_v41 = vmul.f32 %v4256_v58, %v5169_v12  ;;  %4041 = vmatprep.mubr.msk.bf16.mxu0 %vm2188_vm2, %v2549_v52  ;;  %v4258_v48 = vpop.eup %4257  ;;  %v3531_v58 = vld [vmem:[%s5385_s10 + $0xc] sm:$0xf] }
 0x566   : > { %v2529_v38 = vmul.f32 %v4258_v48, %v5167_v53 }
 0x567   : > { %v2550_v21 = vpack.c.bf16 %v2528_v41, %v2527_v62 }
 0x568   : > { %v4260_v3 = vpop.eup %4259 }
 0x569   : > { %4042 = vmatmul.mubr.msk.bf16.vlgmr.msra.gmra.mxu0 %vm2188_vm2, %v2550_v21  ;;  %v2530_v24 = vmul.f32 %v4260_v3, %v5177_v33  ;;  %v4262_v22 = vpop.eup %4261 }
 0x56a   : > { %4060 = vmatpush3.bf16.msra.mxu0 %v2065_v47  ;;  %v2531_v56 = vmul.f32 %v4262_v22, %v5175_v50 }
 0x56b   : > { %4061 = vmatprep.subr.bf16.mxu0 %v5021_v34  ;;  %v2551_v54 = vpack.c.bf16 %v2530_v24, %v2529_v38 }
 0x56c   : > { %v4264_v35 = vpop.eup %4263 }
 0x56d   : > { %4045 = vmatprep.mubr.msk.bf16.mxu0 %vm2188_vm2, %v2551_v54  ;;  %v2532_v12 = vmul.f32 %v4264_v35, %v5183_v25 }
 0x56e   : > { %4062 = vmatpush3.bf16.msra.mxu0 %v5021_v34 }
 0x56f   : > { %4063 = vmatprep.subr.bf16.mxu0 %v5008_v9  ;;  %v2552_v5 = vpack.c.bf16 %v2532_v12, %v2531_v56 }
 0x571   : > { %4046 = vmatmul.mubr.msk.bf16.gmra.mxu0 %vm2188_vm2, %v2552_v5  ;;  %v3181_v5 = vsel %vm2666_vm3, %v3531_v58, 0 }
 0x572   : > { %4064 = vmatpush3.bf16.msra.mxu0 %v5008_v9 }
 0x573   : > { %4065 = vmatprep.subr.bf16.mxu0 %v5015_v4 }
 0x576   : > { %4066 = vmatpush3.bf16.msra.mxu0 %v5015_v4 }
 0x57e   : > { %v2455_v53 = vpop.xlane.xlu0 %2454 }
 0x57f   : > { %4265 = vrcp.f32 %v2455_v53 }
 0x582   : > { %v2461_v33 = vpop.xlane.xlu0 %2460 }
 0x583   : > { %v2458_v16 = vpop.xlane.xlu1 %2457 }
 0x584   : > { %4267 = vrcp.f32 %v2458_v16 }
 0x585   : > { %4269 = vrcp.f32 %v2461_v33 }
 0x586   : > { %v2467_v50 = vpop.xlane.xlu0 %2466 }
 0x587   : > { %v2464_v25 = vpop.xlane.xlu1 %2463 }
 0x588   : > { %4271 = vrcp.f32 %v2464_v25 }
 0x589   : > { %4273 = vrcp.f32 %v2467_v50 }
 0x58a   : > { %v2473_v34 = vpop.xlane.xlu0 %2472 }
 0x58b   : > { %v2470_v44 = vpop.xlane.xlu1 %2469 }
 0x58c   : > { %4275 = vrcp.f32 %v2470_v44  ;;  %v4266_v19 = vpop.eup %4265 }
 0x58d   : > { %4277 = vrcp.f32 %v2473_v34  ;;  %v2533_v4 = vmul.f32 %v4266_v19, %v5195_v6 }
 0x58f   : > { %v2476_v9 = vpop.xlane.xlu1 %2475 }
 0x590   : > { %4279 = vrcp.f32 %v2476_v9 }
 0x591   : > { %v4268_v36 = vpop.eup %4267 }
 0x592   : > { %v2534_v23 = vmul.f32 %v4268_v36, %v5201_v59  ;;  %v4270_v30 = vpop.eup %4269 }
 0x593   : > { %v2535_v37 = vmul.f32 %v4270_v30, %v5199_v2 }
 0x594   : > { %v2553_v17 = vpack.c.bf16 %v2534_v23, %v2533_v4 }
 0x595   : > { %v4272_v43 = vpop.eup %4271 }
 0x596   : > { %v2536_v55 = vmul.f32 %v4272_v43, %v5209_v7  ;;  %4067 = vmatprep.mubr.msk.bf16.mxu0 %vm2188_vm2, %v2553_v17  ;;  %v4274_v28 = vpop.eup %4273 }
 0x597   : > { %v2537_v60 = vmul.f32 %v4274_v28, %v5207_v8 }
 0x598   : > { %v2554_v31 = vpack.c.bf16 %v2536_v55, %v2535_v37 }
 0x599   : > { %v4276_v49 = vpop.eup %4275 }
 0x59a   : > { %4068 = vmatmul.mubr.msk.bf16.vlgmr.msra.gmra.mxu0 %vm2188_vm2, %v2554_v31  ;;  %v2538_v6 = vmul.f32 %v4276_v49, %v5217_v26  ;;  %v4278_v18 = vpop.eup %4277  ;;  %v2839_v26 = vsel %vm2666_vm3, %v5272_v61, 0 }
 0x59b   : > { %v2539_v2 = vmul.f32 %v4278_v18, %v5215_v14  ;;  %v3522_v14 = vld [vmem:[%s5385_s10 + $0x8] sm:$0xf] }
 0x59c   : > { %v2555_v59 = vpack.c.bf16 %v2538_v6, %v2537_v60  ;;  %v3010_v61 = vsel %vm2666_vm3, %v3522_v14, 0 }
 0x59d   : > { %v4280_v57 = vpop.eup %4279 }
 0x59e   : > { %4071 = vmatprep.mubr.msk.bf16.mxu0 %vm2188_vm2, %v2555_v59  ;;  %v2540_v7 = vmul.f32 %v4280_v57, %v5223_v42 }
 0x5a0   : > { %v2556_v0 = vpack.c.bf16 %v2540_v7, %v2539_v2 }
 0x5a2   : > { %4072 = vmatmul.mubr.msk.bf16.gmra.mxu0 %vm2188_vm2, %v2556_v0 }
 0x5cc   : > { %v3991_v47 = vpop.f32.mrf.mxu1 }
 0x5ce   : > { %v2618_v1 = vpop.f32.mrf.mxu1 }
 0x5d0   : > { %v3992_v15 = vpop.f32.mrf.mxu1 }
 0x5d1   : > { %v2650_v8 = vpack.c.bf16 %v3992_v15, %v3991_v47 }
 0x5d2   : > { %v2621_v46 = vpop.f32.mrf.mxu1 }
 0x5d3   : > { %v2649_v11 = vpack.c.bf16 %v2621_v46, %v2618_v1 }
 0x5d4   : > { %v3995_v29 = vpop.f32.mrf.mxu1 }
 0x5d5   : > { %3999 = vmatprep.mubr.msk.bf16.mxu1 %vm854_vm1, %v2649_v11 }
 0x5d6   : > { %v2634_v42 = vpop.f32.mrf.mxu1  ;;  %4000 = vmatmul.mubr.msk.bf16.vlgmr.msra.gmra.mxu1 %vm854_vm1, %v2650_v8 }
 0x5d7   : > { %4024 = vmatpush3.bf16.msra.mxu1 %v2839_v26 }
 0x5d8   : > { %v3996_v10 = vpop.f32.mrf.mxu1  ;;  %4103 = vmatprep.subr.msk.bf16.mxu1 %vm2666_vm3, %v3522_v14 }
 0x5d9   : > { %v2652_v63 = vpack.c.bf16 %v3996_v10, %v3995_v29  ;;  %v3500_v10 = vld [vmem:[%s5386_s11] ss:$0 sm:$0xff] }
 0x5da   : > { %v2637_v20 = vpop.f32.mrf.mxu1 }
 0x5db   : > { %v2651_v40 = vpack.c.bf16 %v2637_v20, %v2634_v42 }
 0x5dc   : > { %v4017_v32 = vpop.f32.mrf.mxu0 }
 0x5dd   : > { %4003 = vmatprep.mubr.msk.bf16.mxu1 %vm854_vm1, %v2651_v40  ;;  %v4281_v40 = vld [vmem:[%s4378_s27 + $0x10] sm:$0xff] }
 0x5de   : > { %4004 = vmatmul.mubr.msk.bf16.gmra.mxu1 %vm854_vm1, %v2652_v63  ;;  %v2789_v27 = vpop.f32.mrf.mxu0  ;;  %v2566_v63 = vadd.f32 %v4281_v40, %v3500_v10 }
 0x5e0   : > { %v4018_v45 = vpop.f32.mrf.mxu0 }
 0x5e1   : > { %v2821_v51 = vpack.c.bf16 %v4018_v45, %v4017_v32  ;;  %v4282_v32 = vld [vmem:[%s4378_s27] sm:$0xff] }
 0x5e2   : > { %v2792_v39 = vpop.f32.mrf.mxu0 }
 0x5e3   : > { %v2820_v13 = vpack.c.bf16 %v2792_v39, %v2789_v27  ;;  %v2564_v27 = vadd.f32 %v4282_v32, %v3500_v10 }
 0x5e4   : > { %v4021_v52 = vpop.f32.mrf.mxu0 }
 0x5e5   : > { %4025 = vmatprep.mubr.msk.bf16.mxu1 %vm854_vm1, %v2820_v13  ;;  %v4283_v13 = vld [vmem:[%s4378_s27 + $0x18] sm:$0xff] }
 0x5e6   : > { %v2805_v62 = vpop.f32.mrf.mxu0  ;;  %4026 = vmatmul.mubr.msk.bf16.vlgmr.msra.gmra.mxu1 %vm854_vm1, %v2821_v51  ;;  %v2567_v51 = vadd.f32 %v4283_v13, %v3500_v10 }
 0x5e7   : > { %4050 = vmatpush3.bf16.msra.mxu1 %v3010_v61  ;;  %v4284_v61 = vld [vmem:[%s4378_s27 + $0x8] sm:$0xff] }
 0x5e8   : > { %v4022_v41 = vpop.f32.mrf.mxu0  ;;  %4104 = vmatprep.subr.msk.bf16.mxu1 %vm2666_vm3, %v3531_v58  ;;  %v2565_v58 = vadd.f32 %v4284_v61, %v3500_v10 }
 0x5e9   : > { %v2823_v3 = vpack.c.bf16 %v4022_v41, %v4021_v52 }
 0x5ea   : > { %v2808_v48 = vpop.f32.mrf.mxu0 }
 0x5eb   : > { %v2822_v21 = vpack.c.bf16 %v2808_v48, %v2805_v62 }
 0x5ed   : > { %4029 = vmatprep.mubr.msk.bf16.mxu1 %vm854_vm1, %v2822_v21  ;;  %v4285_v21 = vld [vmem:[%s4378_s27 + $0x30] sm:$0xff] }
 0x5ee   : > { %4030 = vmatmul.mubr.msk.bf16.gmra.mxu1 %vm854_vm1, %v2823_v3  ;;  %v2570_v3 = vadd.f32 %v4285_v21, %v3500_v10 }
 0x629   : > { %v4043_v38 = vpop.f32.mrf.mxu0 }
 0x62b   : > { %v2960_v24 = vpop.f32.mrf.mxu0 }
 0x62d   : > { %v4044_v22 = vpop.f32.mrf.mxu0 }
 0x62e   : > { %v2992_v56 = vpack.c.bf16 %v4044_v22, %v4043_v38  ;;  %v4286_v22 = vld [vmem:[%s4378_s27 + $0x20] sm:$0xff] }
 0x62f   : > { %v2963_v54 = vpop.f32.mrf.mxu0 }
 0x630   : > { %v2991_v35 = vpack.c.bf16 %v2963_v54, %v2960_v24  ;;  %v2568_v54 = vadd.f32 %v4286_v22, %v3500_v10 }
 0x631   : > { %v4047_v12 = vpop.f32.mrf.mxu0 }
 0x632   : > { %4051 = vmatprep.mubr.msk.bf16.mxu1 %vm854_vm1, %v2991_v35 }
 0x633   : > { %v2976_v53 = vpop.f32.mrf.mxu0  ;;  %4052 = vmatmul.mubr.msk.bf16.vlgmr.msra.gmra.mxu1 %vm854_vm1, %v2992_v56 }
 0x634   : > { %4076 = vmatpush3.bf16.msra.mxu1 %v3181_v5 }
 0x635   : > { %v4048_v33 = vpop.f32.mrf.mxu0 }
 0x636   : > { %v2994_v25 = vpack.c.bf16 %v4048_v33, %v4047_v12  ;;  %v4287_v33 = vld [vmem:[%s4378_s27 + $0x38] sm:$0xff] }
 0x637   : > { %v2979_v16 = vpop.f32.mrf.mxu0 }
 0x638   : > { %v2993_v50 = vpack.c.bf16 %v2979_v16, %v2976_v53  ;;  %v2571_v16 = vadd.f32 %v4287_v33, %v3500_v10 }
 0x63a   : > { %4055 = vmatprep.mubr.msk.bf16.mxu1 %vm854_vm1, %v2993_v50 }
 0x63b   : > { %4056 = vmatmul.mubr.msk.bf16.gmra.mxu1 %vm854_vm1, %v2994_v25 }
 0x65a   : > { %v4069_v34 = vpop.f32.mrf.mxu0 }
 0x65c   : > { %v3131_v44 = vpop.f32.mrf.mxu0 }
 0x65e   : > { %v4070_v19 = vpop.f32.mrf.mxu0 }
 0x65f   : > { %v3163_v4 = vpack.c.bf16 %v4070_v19, %v4069_v34 }
 0x660   : > { %v3134_v9 = vpop.f32.mrf.mxu0 }
 0x661   : > { %v3162_v36 = vpack.c.bf16 %v3134_v9, %v3131_v44  ;;  %v4288_v9 = vld [vmem:[%s4378_s27 + $0x28] sm:$0xff] }
 0x662   : > { %v4073_v23 = vpop.f32.mrf.mxu0 }
 0x663   : > { %4077 = vmatprep.mubr.msk.bf16.mxu1 %vm854_vm1, %v3162_v36  ;;  %v2569_v36 = vadd.f32 %v4288_v9, %v3500_v10 }
 0x664   : > { %v3147_v30 = vpop.f32.mrf.mxu0  ;;  %4078 = vmatmul.mubr.msk.bf16.vlgmr.msra.gmra.mxu1 %vm854_vm1, %v3163_v4 }
 0x666   : > { %v4074_v17 = vpop.f32.mrf.mxu0 }
 0x667   : > { %v3165_v55 = vpack.c.bf16 %v4074_v17, %v4073_v23 }
 0x668   : > { %v3150_v43 = vpop.f32.mrf.mxu0 }
 0x669   : > { %v3164_v37 = vpack.c.bf16 %v3150_v43, %v3147_v30 }
 0x66b   : > { %4081 = vmatprep.mubr.msk.bf16.mxu1 %vm854_vm1, %v3164_v37 }
 0x66c   : > { %4082 = vmatmul.mubr.msk.bf16.gmra.mxu1 %vm854_vm1, %v3165_v55 }
 0x696   : > { %v4001_v28 = vpop.f32.mrf.mxu1 }
 0x697   : > { %v2737_v39 = vadd.f32 %v4001_v28, %v2566_v63 }
 0x698   : > { %v2704_v31 = vpop.f32.mrf.mxu1 }
 0x699   : > { %v2735_v52 = vadd.f32 %v2704_v31, %v2564_v27 }
 0x69a   : > { %v4002_v49 = vpop.f32.mrf.mxu1 }
 0x69b   : > { %v2738_v48 = vadd.f32 %v4002_v49, %v2567_v51 }
 0x69c   : > { %v2707_v60 = vpop.f32.mrf.mxu1 }
 0x69d   : > { %v2736_v56 = vadd.f32 %v2707_v60, %v2565_v58 }
 0x69e   : > { %v4005_v6 = vpop.f32.mrf.mxu1 }
 0x69f   : > { %v2741_v25 = vadd.f32 %v4005_v6, %v2570_v3 }
 0x6a0   : > { %v2720_v18 = vpop.f32.mrf.mxu1 }
 0x6a1   : > { %v2739_v23 = vadd.f32 %v2720_v18, %v2568_v54 }
 0x6a2   : > { %v4006_v59 = vpop.f32.mrf.mxu1 }
 0x6a3   : > { %v2742_v55 = vadd.f32 %v4006_v59, %v2571_v16 }
 0x6a4   : > { %v5332_v57 = vpop.f32.mrf.mxu1 }
 0x6a5   : > { %v2740_v6 = vadd.f32 %v5332_v57, %v2569_v36 }
 0x6a6   : > { %v4027_v2 = vpop.f32.mrf.mxu1 }
 0x6a7   : > { %v2908_v62 = vadd.f32 %v4027_v2, %v2737_v39 }
 0x6a8   : > { %v2875_v7 = vpop.f32.mrf.mxu1 }
 0x6a9   : > { %v2906_v38 = vadd.f32 %v2875_v7, %v2735_v52 }
 0x6aa   : > { %v4028_v0 = vpop.f32.mrf.mxu1 }
 0x6ab   : > { %v2909_v12 = vadd.f32 %v4028_v0, %v2738_v48 }
 0x6ac   : > { %v2878_v47 = vpop.f32.mrf.mxu1 }
 0x6ad   : > { %v2907_v34 = vadd.f32 %v2878_v47, %v2736_v56 }
 0x6ae   : > { %v4031_v1 = vpop.f32.mrf.mxu1 }
 0x6af   : > { %v2912_v30 = vadd.f32 %v4031_v1, %v2741_v25 }
 0x6b0   : > { %v2891_v15 = vpop.f32.mrf.mxu1 }
 0x6b1   : > { %v2910_v28 = vadd.f32 %v2891_v15, %v2739_v23 }
 0x6b2   : > { %v4032_v46 = vpop.f32.mrf.mxu1 }
 0x6b3   : > { %v2913_v2 = vadd.f32 %v4032_v46, %v2742_v55 }
 0x6b4   : > { %v5334_v11 = vpop.f32.mrf.mxu1 }
 0x6b5   : > { %v2911_v47 = vadd.f32 %v5334_v11, %v2740_v6 }
 0x6f3   : > { %v4053_v8 = vpop.f32.mrf.mxu1 }
 0x6f4   : > { %v3079_v24 = vadd.f32 %v4053_v8, %v2908_v62 }
 0x6f5   : > { %v3046_v29 = vpop.f32.mrf.mxu1 }
 0x6f6   : > { %v3077_v5 = vadd.f32 %v3046_v29, %v2906_v38 }
 0x6f7   : > { %v4054_v26 = vpop.f32.mrf.mxu1 }
 0x6f8   : > { %v3080_v44 = vadd.f32 %v4054_v26, %v2909_v12 }
 0x6f9   : > { %v3049_v14 = vpop.f32.mrf.mxu1 }
 0x6fa   : > { %v3078_v17 = vadd.f32 %v3049_v14, %v2907_v34 }
 0x6fb   : > { %v4057_v42 = vpop.f32.mrf.mxu1 }
 0x6fc   : > { %v3083_v31 = vadd.f32 %v4057_v42, %v2912_v30 }
 0x6fd   : > { %v3062_v20 = vpop.f32.mrf.mxu1 }
 0x6fe   : > { %v3081_v18 = vadd.f32 %v3062_v20, %v2910_v28 }
 0x6ff   : > { %v4058_v45 = vpop.f32.mrf.mxu1 }
 0x700   : > { %v3084_v59 = vadd.f32 %v4058_v45, %v2913_v2 }
 0x701   : > { %v3065_v41 = vpop.f32.mrf.mxu1 }
 0x702   : > { %v3082_v8 = vadd.f32 %v3065_v41, %v2911_v47 }
 0x724   : > { %v4079_v35 = vpop.f32.mrf.mxu1 }
 0x725   : > { %v3250_v53 = vadd.f32 %v4079_v35, %v3079_v24 }
 0x726   : > { %v3217_v50 = vpop.f32.mrf.mxu1 }
 0x727   : > { %3258 = vst.msk [vmem:[%s5349_s18 + $0x10] sm:$0xff] %vm426_vm0, %v3250_v53  ;;  %v3248_v19 = vadd.f32 %v3217_v50, %v3077_v5 }
 0x728   : > { %v4080_v4 = vpop.f32.mrf.mxu1 }
 0x729   : > { %3256 = vst.msk [vmem:[%s5349_s18] sm:$0xff] %vm426_vm0, %v3248_v19  ;;  %v3251_v43 = vadd.f32 %v4080_v4, %v3080_v44 }
 0x72a   : > { %v3220_v37 = vpop.f32.mrf.mxu1 }
 0x72b   : > { %3259 = vst.msk [vmem:[%s5349_s18 + $0x18] sm:$0xff] %vm426_vm0, %v3251_v43  ;;  %v3249_v49 = vadd.f32 %v3220_v37, %v3078_v17 }
 0x72c   : > { %v4083_v60 = vpop.f32.mrf.mxu1 }
 0x72d   : > { %3257 = vst.msk [vmem:[%s5349_s18 + $0x8] sm:$0xff] %vm426_vm0, %v3249_v49  ;;  %v3254_v7 = vadd.f32 %v4083_v60, %v3083_v31 }
 0x72e   : > { %v3233_v0 = vpop.f32.mrf.mxu1 }
 0x72f   : > { %3262 = vst.msk [vmem:[%s5349_s18 + $0x30] sm:$0xff] %vm426_vm0, %v3254_v7  ;;  %v3252_v1 = vadd.f32 %v3233_v0, %v3081_v18 }
 0x730   : > { %v4084_v15 = vpop.f32.mrf.mxu1 }
 0x731   : > { %3260 = vst.msk [vmem:[%s5349_s18 + $0x20] sm:$0xff] %vm426_vm0, %v3252_v1  ;;  %v3255_v29 = vadd.f32 %v4084_v15, %v3084_v59 }
 0x732   : > { %v3236_v26 = vpop.f32.mrf.mxu1 }
 0x733   : > { %3263 = vst.msk [vmem:[%s5349_s18 + $0x38] sm:$0xff] %vm426_vm0, %v3255_v29  ;;  %v3253_v57 = vadd.f32 %v3236_v26, %v3082_v8 }
 0x735   : > { %3261 = vst.msk [vmem:[%s5349_s18 + $0x28] sm:$0xff] %vm426_vm0, %v3253_v57 }
 0x736 PF: > { %s22_s21 = sadd.s32 1, %s4295_s21  }
 0x737   : > { %p19_p4 = scmp.ge.s32.totalorder %s22_s21, 4  }
 0x739   :  { %21 = sbr.rel (!%p19_p4) target bundleno = 1 (0x1), region = 122 }

</bundles_post_ra>
